<compile_context>
chip_gen: v5e
topology: v5e:2x2
jax: 0.10.0
libtpu: 0.0.40
codegen_flags: <defaults>
</compile_context>

<pallas_src>
import functools

import jax
import jax.numpy as jnp
from jax import lax
from jax.experimental import pallas as pl
from jax.experimental.pallas import tpu as pltpu


# ----------------------------------------------------------------------------
# Kernels
# ----------------------------------------------------------------------------
def _novelty_kernel_mxu(s_ref, t_ref, mu_ref, o_ref):
    """MXU path (use when D and O are large enough to fill the MXU).

    s_ref  : (RB, CB, D)  S tile                          (compute dtype)
    t_ref  : (RB, D, O)   T[i,q,o] = sum_p d[i,p]W[o,p,q] (compute dtype)
    mu_ref : (1, 1, O)    mu weights                      (float32, VMEM)
    o_ref  : (RB, CB)     lane-dense output               (float32)
    """
    # scores[i, j, o] = sum_q S[i, j, q] * T[i, q, o]   ('ijq,iqo->ijo')
    scores = lax.dot_general(
        s_ref[...], t_ref[...],
        dimension_numbers=(((2,), (1,)), ((0,), (0,))),
        preferred_element_type=jnp.float32)                      # (RB, CB, O) f32

    act = jnp.tanh(scores)                                       # EUP, f32
    # mu: out_dim -> 1 as a VPU broadcast-multiply + lane reduction
    # (not an N=1 MXU matmul; avoids a lane-width-1 store).
    o_ref[...] = jnp.sum(act * mu_ref[...], axis=-1)             # (RB, CB) f32


def _novelty_kernel_vpu(s_ref, t_ref, mu_ref, o_ref, *, out_dim):
    """VPU path for small out_dim (toy D=32, O=16: the MXU would be ~98% padding).

    s_ref  : (RB, CB, D)  S tile                          (compute dtype)
    t_ref  : (RB, O, D)   T[i,o,q] = sum_p d[i,p]W[o,p,q] (float32)
    mu_ref : (O,)         mu weights                      (float32, SMEM scalars)
    o_ref  : (RB, CB)     lane-dense output               (float32)
    """
    s = s_ref[...].astype(jnp.float32)                 # hoisted; reused for every o
    acc = jnp.zeros(o_ref.shape, jnp.float32)
    for o in range(out_dim):                           # static unroll, O is small here
        t_o = t_ref[:, o:o + 1, :].astype(jnp.float32)            # (RB, 1, D)
        sc = jnp.sum(s * t_o, axis=-1)                            # (RB, CB) lane reduce
        acc = acc + mu_ref[o] * jnp.tanh(sc)                      # SMEM scalar * vreg
    o_ref[...] = acc


# ----------------------------------------------------------------------------
# Wrapper
# ----------------------------------------------------------------------------
def _choose_tiling(K, D, itemsize):
    """Pick (row_block, col_block) dividing K.

    col_block: full K unless K is a multiple of 128 (then a lane-dense multiple
    of 128 to bound VMEM for big K).  row_block: multiple of 8 dividing K with
    one S block ~<=2 MiB and >=2 row steps whenever K permits (v7x megacore,
    double-buffer overlap); falls back to K for the toy sizes.
    """
    if K % 128 == 0 and K > 128:
        col_block = 128
        for cb in (512, 256, 128):
            if K % cb == 0:
                col_block = cb
                break
    else:
        col_block = K

    row_block = K
    if K % 8 == 0 and K > 8:
        target_bytes = 2 * 1024 * 1024
        best = 8
        rb = 8
        while rb <= K // 2:
            if K % rb == 0 and rb * col_block * D * itemsize <= target_bytes:
                best = rb
            rb += 8
        row_block = best
    return row_block, col_block


def novelty_ntn(d, S, W, mu_w, *, compute_dtype=jnp.bfloat16, use_mxu=None,
                row_block=None, col_block=None):
    """NoveltyNTN forward.

    d: (K, 1, D), S: (K, K, D), W: (O, D, D), mu_w: (1, O)  ->  (K, K, 1) f32.
    """
    K, one, D = d.shape
    assert one == 1
    O = W.shape[0]
    assert S.shape == (K, K, D)
    assert W.shape == (O, D, D)
    assert mu_w.shape == (1, O)

    if use_mxu is None:
        # Small O => per-channel VPU contraction (the 128/256-wide MXU would be
        # almost entirely padding at D=32 / O=16 and worse on v6e/v7x).
        use_mxu = O > 64

    itemsize = jnp.dtype(compute_dtype).itemsize
    auto_rb, auto_cb = _choose_tiling(K, D, itemsize)
    if row_block is None:
        row_block = auto_rb
    if col_block is None:
        col_block = auto_cb
    assert K % row_block == 0 and K % col_block == 0
    assert row_block == K or row_block % 8 == 0      # (8,128)-legal blocks
    assert col_block == K or col_block % 128 == 0    # lane-dense output stores

    # d-side bilinear contraction hoisted out of the kernel:
    #   T[i, ., .] = sum_p d[i, p] * W[., p, .]   (O(K*D*D*O), negligible)
    d2 = d[:, 0, :].astype(jnp.float32)
    W32 = W.astype(jnp.float32)
    s_in = S.astype(compute_dtype)                   # HBM-bound: bf16 by default

    grid = (K // row_block, K // col_block)
    s_spec = pl.BlockSpec((row_block, col_block, D), lambda i, j: (i, j, 0))
    out_spec = pl.BlockSpec((row_block, col_block), lambda i, j: (i, j))

    if use_mxu:
        t_in = jnp.einsum('kp,opq->kqo', d2, W32).astype(compute_dtype)  # (K, D, O)
        mu_in = mu_w.reshape(1, 1, O).astype(jnp.float32)
        t_spec = pl.BlockSpec((row_block, D, O), lambda i, j: (i, 0, 0))
        mu_spec = pl.BlockSpec((1, 1, O), lambda i, j: (0, 0, 0))
        kernel = _novelty_kernel_mxu
    else:
        # Keep T in f32 on the VPU path (tiny HBM traffic; avoids compounding
        # bf16 rounding of the two contractions).
        t_in = jnp.einsum('kp,opq->koq', d2, W32)                        # (K, O, D)
        mu_in = mu_w.reshape(O).astype(jnp.float32)
        t_spec = pl.BlockSpec((row_block, O, D), lambda i, j: (i, 0, 0))
        mu_spec = pl.BlockSpec(memory_space=pltpu.MemorySpace.SMEM)      # scalar reads
        kernel = functools.partial(_novelty_kernel_vpu, out_dim=O)

    # Explicit VMEM budget: double-buffered S/out blocks, T block, and the
    # lane-padded f32 scores intermediate (MXU path).  Kept below v7x's 64 MiB
    # physical VMEM while overriding the conservative scoped defaults.
    est = (2 * row_block * col_block * D * itemsize      # S, double-buffered
           + 2 * row_block * D * O * 4                   # T block
           + 2 * row_block * col_block * 4               # out, double-buffered
           + row_block * col_block * max(O, 128) * 4     # f32 scores (lane-padded)
           + (1 << 20))                                  # slack
    vmem_limit = int(min(64 << 20, max(32 << 20, 2 * est)))

    out2d = pl.pallas_call(
        kernel,
        out_shape=jax.ShapeDtypeStruct((K, K), jnp.float32),  # lane-dense output
        grid_spec=pl.GridSpec(
            grid=grid,
            in_specs=[s_spec, t_spec, mu_spec],
            out_specs=out_spec),
        compiler_params=pltpu.CompilerParams(
            # Row/column blocks are independent -> shards across both
            # TensorCores on v7x; single serial step at the toy sizes.
            dimension_semantics=("parallel", "parallel"),
            vmem_limit_bytes=vmem_limit),
    )(s_in, t_in, mu_in)

    # Restore the torch output's trailing size-1 dim outside the kernel
    # (free layout plumbing; keeps the in-kernel store lane-dense).
    return out2d.reshape(K, K, 1)


def novelty_ntn_reference(d, S, W, mu_w):
    """Pure-JAX reference reproducing the torch forward pass."""
    d_exp = jnp.broadcast_to(d, (d.shape[0], S.shape[0], d.shape[2]))   # expand
    scores = jnp.einsum('ijp,opq,ijq->ijo', d_exp, W, S)                # Bilinear
    scores = jnp.tanh(scores)
    return jnp.einsum('ijo,no->ijn', scores, mu_w)                      # mu Linear


# ----------------------------------------------------------------------------
# Self-test
# ----------------------------------------------------------------------------
if __name__ == "__main__":
    def make_inputs(K, D, O):
        key = jax.random.PRNGKey(0)
        k_w, k_mu, k_d, k_s = jax.random.split(key, 4)
        # Deterministic "nn.Bilinear / nn.Linear"-style init (uniform, no bias).
        w_bound = 1.0 / (D ** 0.5)
        mu_bound = 1.0 / (O ** 0.5)
        W = jax.random.uniform(k_w, (O, D, D), jnp.float32, -w_bound, w_bound)
        mu_w = jax.random.uniform(k_mu, (1, O), jnp.float32, -mu_bound, mu_bound)
        d = jax.random.normal(k_d, (K, 1, D), jnp.float32)
        S = jax.random.normal(k_s, (K, K, D), jnp.float32)
        return d, S, W, mu_w

    # Case 1: toy dims (K=8, D=32, O=16) — single-step grid, VPU contraction
    # path, bf16 S by default.
    d, S, W, mu_w = make_inputs(8, 32, 16)
    ref = novelty_ntn_reference(d, S, W, mu_w)

    out = jax.block_until_ready(novelty_ntn(d, S, W, mu_w))      # bf16, VPU path
    assert out.shape == (8, 8, 1)
    assert jnp.allclose(out, ref, rtol=5e-2, atol=5e-2), "bf16/VPU mismatch"

    out_f32 = jax.block_until_ready(
        novelty_ntn(d, S, W, mu_w, compute_dtype=jnp.float32))   # f32, VPU path
    assert jnp.allclose(out_f32, ref, rtol=1e-3, atol=1e-4), "f32/VPU mismatch"

    out_mxu = jax.block_until_ready(
        novelty_ntn(d, S, W, mu_w, compute_dtype=jnp.float32,
                    use_mxu=True))                               # f32, MXU path
    assert jnp.allclose(out_mxu, ref, rtol=1e-3, atol=1e-4), "f32/MXU mismatch"

    # Case 2: K=16 exercises the row-tiled, 2-step "parallel" grid
    # (double-buffered S blocks; shards across both TCs on v7x).
    d, S, W, mu_w = make_inputs(16, 32, 16)
    ref = novelty_ntn_reference(d, S, W, mu_w)
    out = jax.block_until_ready(novelty_ntn(d, S, W, mu_w))
    assert out.shape == (16, 16, 1)
    assert jnp.allclose(out, ref, rtol=5e-2, atol=5e-2), "tiled-grid mismatch"

    print("KERNEL_OK")
</pallas_src>

<mosaic_0001>
module attributes {stable_mosaic.version = 11 : i64} {
  func.func @_novelty_kernel_vpu(%arg0: i32, %arg1: i32, %arg2: memref<8x8x32xbf16, #tpu.memory_space<vmem>>, %arg3: memref<8x16x32xf32, #tpu.memory_space<vmem>>, %arg4: memref<16xf32, #tpu.memory_space<smem>>, %arg5: memref<8x8xf32, #tpu.memory_space<vmem>>) attributes {dimension_semantics = [#tpu.dimension_semantics<parallel>, #tpu.dimension_semantics<parallel>], iteration_bounds = array<i64: 1, 1>, scalar_prefetch = 0 : i64, scratch_operands = 0 : i64, tpu.core_type = #tpu.core_type<tc>, window_params = [{transform_indices = @transform_0, window_bounds = array<i64: 8, 8, 32>}, {transform_indices = @transform_1, window_bounds = array<i64: 8, 16, 32>}, {transform_indices = @transform_2, window_bounds = array<i64: 16>}, {transform_indices = @transform_3, window_bounds = array<i64: 8, 8>}]} {
    %c0 = arith.constant 0 : index
    %c0_0 = arith.constant 0 : index
    %c0_1 = arith.constant 0 : index
    %0 = vector.load %arg2[%c0, %c0_0, %c0_1] : memref<8x8x32xbf16, #tpu.memory_space<vmem>>, vector<8x8x32xbf16>
    %1 = arith.extf %0 : vector<8x8x32xbf16> to vector<8x8x32xf32>
    %cst = arith.constant 0.000000e+00 : f32
    %2 = vector.broadcast %cst : f32 to vector<8x8xf32>
    %c0_2 = arith.constant 0 : index
    %c0_3 = arith.constant 0 : index
    %c0_4 = arith.constant 0 : index
    %3 = vector.load %arg3[%c0_2, %c0_3, %c0_4] : memref<8x16x32xf32, #tpu.memory_space<vmem>>, vector<8x1x32xf32>
    %4 = vector.broadcast %3 : vector<8x1x32xf32> to vector<8x8x32xf32>
    %5 = arith.mulf %1, %4 : vector<8x8x32xf32>
    %cst_5 = arith.constant dense<0.000000e+00> : vector<8x8xf32>
    %6 = vector.multi_reduction <add>, %5, %cst_5 [2] : vector<8x8x32xf32> to vector<8x8xf32>
    %c0_6 = arith.constant 0 : index
    %7 = memref.load %arg4[%c0_6] : memref<16xf32, #tpu.memory_space<smem>>
    %8 = math.tanh %6 : vector<8x8xf32>
    %9 = vector.broadcast %7 : f32 to vector<8x8xf32>
    %10 = arith.mulf %9, %8 : vector<8x8xf32>
    %11 = arith.addf %2, %10 : vector<8x8xf32>
    %c0_7 = arith.constant 0 : index
    %c1 = arith.constant 1 : index
    %c0_8 = arith.constant 0 : index
    %12 = vector.load %arg3[%c0_7, %c1, %c0_8] : memref<8x16x32xf32, #tpu.memory_space<vmem>>, vector<8x1x32xf32>
    %13 = vector.broadcast %12 : vector<8x1x32xf32> to vector<8x8x32xf32>
    %14 = arith.mulf %1, %13 : vector<8x8x32xf32>
    %cst_9 = arith.constant dense<0.000000e+00> : vector<8x8xf32>
    %15 = vector.multi_reduction <add>, %14, %cst_9 [2] : vector<8x8x32xf32> to vector<8x8xf32>
    %c1_10 = arith.constant 1 : index
    %16 = memref.load %arg4[%c1_10] : memref<16xf32, #tpu.memory_space<smem>>
    %17 = math.tanh %15 : vector<8x8xf32>
    %18 = vector.broadcast %16 : f32 to vector<8x8xf32>
    %19 = arith.mulf %18, %17 : vector<8x8xf32>
    %20 = arith.addf %11, %19 : vector<8x8xf32>
    %c0_11 = arith.constant 0 : index
    %c2 = arith.constant 2 : index
    %c0_12 = arith.constant 0 : index
    %21 = vector.load %arg3[%c0_11, %c2, %c0_12] : memref<8x16x32xf32, #tpu.memory_space<vmem>>, vector<8x1x32xf32>
    %22 = vector.broadcast %21 : vector<8x1x32xf32> to vector<8x8x32xf32>
    %23 = arith.mulf %1, %22 : vector<8x8x32xf32>
    %cst_13 = arith.constant dense<0.000000e+00> : vector<8x8xf32>
    %24 = vector.multi_reduction <add>, %23, %cst_13 [2] : vector<8x8x32xf32> to vector<8x8xf32>
    %c2_14 = arith.constant 2 : index
    %25 = memref.load %arg4[%c2_14] : memref<16xf32, #tpu.memory_space<smem>>
    %26 = math.tanh %24 : vector<8x8xf32>
    %27 = vector.broadcast %25 : f32 to vector<8x8xf32>
    %28 = arith.mulf %27, %26 : vector<8x8xf32>
    %29 = arith.addf %20, %28 : vector<8x8xf32>
    %c0_15 = arith.constant 0 : index
    %c3 = arith.constant 3 : index
    %c0_16 = arith.constant 0 : index
    %30 = vector.load %arg3[%c0_15, %c3, %c0_16] : memref<8x16x32xf32, #tpu.memory_space<vmem>>, vector<8x1x32xf32>
    %31 = vector.broadcast %30 : vector<8x1x32xf32> to vector<8x8x32xf32>
    %32 = arith.mulf %1, %31 : vector<8x8x32xf32>
    %cst_17 = arith.constant dense<0.000000e+00> : vector<8x8xf32>
    %33 = vector.multi_reduction <add>, %32, %cst_17 [2] : vector<8x8x32xf32> to vector<8x8xf32>
    %c3_18 = arith.constant 3 : index
    %34 = memref.load %arg4[%c3_18] : memref<16xf32, #tpu.memory_space<smem>>
    %35 = math.tanh %33 : vector<8x8xf32>
    %36 = vector.broadcast %34 : f32 to vector<8x8xf32>
    %37 = arith.mulf %36, %35 : vector<8x8xf32>
    %38 = arith.addf %29, %37 : vector<8x8xf32>
    %c0_19 = arith.constant 0 : index
    %c4 = arith.constant 4 : index
    %c0_20 = arith.constant 0 : index
    %39 = vector.load %arg3[%c0_19, %c4, %c0_20] : memref<8x16x32xf32, #tpu.memory_space<vmem>>, vector<8x1x32xf32>
    %40 = vector.broadcast %39 : vector<8x1x32xf32> to vector<8x8x32xf32>
    %41 = arith.mulf %1, %40 : vector<8x8x32xf32>
    %cst_21 = arith.constant dense<0.000000e+00> : vector<8x8xf32>
    %42 = vector.multi_reduction <add>, %41, %cst_21 [2] : vector<8x8x32xf32> to vector<8x8xf32>
    %c4_22 = arith.constant 4 : index
    %43 = memref.load %arg4[%c4_22] : memref<16xf32, #tpu.memory_space<smem>>
    %44 = math.tanh %42 : vector<8x8xf32>
    %45 = vector.broadcast %43 : f32 to vector<8x8xf32>
    %46 = arith.mulf %45, %44 : vector<8x8xf32>
    %47 = arith.addf %38, %46 : vector<8x8xf32>
    %c0_23 = arith.constant 0 : index
    %c5 = arith.constant 5 : index
    %c0_24 = arith.constant 0 : index
    %48 = vector.load %arg3[%c0_23, %c5, %c0_24] : memref<8x16x32xf32, #tpu.memory_space<vmem>>, vector<8x1x32xf32>
    %49 = vector.broadcast %48 : vector<8x1x32xf32> to vector<8x8x32xf32>
    %50 = arith.mulf %1, %49 : vector<8x8x32xf32>
    %cst_25 = arith.constant dense<0.000000e+00> : vector<8x8xf32>
    %51 = vector.multi_reduction <add>, %50, %cst_25 [2] : vector<8x8x32xf32> to vector<8x8xf32>
    %c5_26 = arith.constant 5 : index
    %52 = memref.load %arg4[%c5_26] : memref<16xf32, #tpu.memory_space<smem>>
    %53 = math.tanh %51 : vector<8x8xf32>
    %54 = vector.broadcast %52 : f32 to vector<8x8xf32>
    %55 = arith.mulf %54, %53 : vector<8x8xf32>
    %56 = arith.addf %47, %55 : vector<8x8xf32>
    %c0_27 = arith.constant 0 : index
    %c6 = arith.constant 6 : index
    %c0_28 = arith.constant 0 : index
    %57 = vector.load %arg3[%c0_27, %c6, %c0_28] : memref<8x16x32xf32, #tpu.memory_space<vmem>>, vector<8x1x32xf32>
    %58 = vector.broadcast %57 : vector<8x1x32xf32> to vector<8x8x32xf32>
    %59 = arith.mulf %1, %58 : vector<8x8x32xf32>
    %cst_29 = arith.constant dense<0.000000e+00> : vector<8x8xf32>
    %60 = vector.multi_reduction <add>, %59, %cst_29 [2] : vector<8x8x32xf32> to vector<8x8xf32>
    %c6_30 = arith.constant 6 : index
    %61 = memref.load %arg4[%c6_30] : memref<16xf32, #tpu.memory_space<smem>>
    %62 = math.tanh %60 : vector<8x8xf32>
    %63 = vector.broadcast %61 : f32 to vector<8x8xf32>
    %64 = arith.mulf %63, %62 : vector<8x8xf32>
    %65 = arith.addf %56, %64 : vector<8x8xf32>
    %c0_31 = arith.constant 0 : index
    %c7 = arith.constant 7 : index
    %c0_32 = arith.constant 0 : index
    %66 = vector.load %arg3[%c0_31, %c7, %c0_32] : memref<8x16x32xf32, #tpu.memory_space<vmem>>, vector<8x1x32xf32>
    %67 = vector.broadcast %66 : vector<8x1x32xf32> to vector<8x8x32xf32>
    %68 = arith.mulf %1, %67 : vector<8x8x32xf32>
    %cst_33 = arith.constant dense<0.000000e+00> : vector<8x8xf32>
    %69 = vector.multi_reduction <add>, %68, %cst_33 [2] : vector<8x8x32xf32> to vector<8x8xf32>
    %c7_34 = arith.constant 7 : index
    %70 = memref.load %arg4[%c7_34] : memref<16xf32, #tpu.memory_space<smem>>
    %71 = math.tanh %69 : vector<8x8xf32>
    %72 = vector.broadcast %70 : f32 to vector<8x8xf32>
    %73 = arith.mulf %72, %71 : vector<8x8xf32>
    %74 = arith.addf %65, %73 : vector<8x8xf32>
    %c0_35 = arith.constant 0 : index
    %c8 = arith.constant 8 : index
    %c0_36 = arith.constant 0 : index
    %75 = vector.load %arg3[%c0_35, %c8, %c0_36] : memref<8x16x32xf32, #tpu.memory_space<vmem>>, vector<8x1x32xf32>
    %76 = vector.broadcast %75 : vector<8x1x32xf32> to vector<8x8x32xf32>
    %77 = arith.mulf %1, %76 : vector<8x8x32xf32>
    %cst_37 = arith.constant dense<0.000000e+00> : vector<8x8xf32>
    %78 = vector.multi_reduction <add>, %77, %cst_37 [2] : vector<8x8x32xf32> to vector<8x8xf32>
    %c8_38 = arith.constant 8 : index
    %79 = memref.load %arg4[%c8_38] : memref<16xf32, #tpu.memory_space<smem>>
    %80 = math.tanh %78 : vector<8x8xf32>
    %81 = vector.broadcast %79 : f32 to vector<8x8xf32>
    %82 = arith.mulf %81, %80 : vector<8x8xf32>
    %83 = arith.addf %74, %82 : vector<8x8xf32>
    %c0_39 = arith.constant 0 : index
    %c9 = arith.constant 9 : index
    %c0_40 = arith.constant 0 : index
    %84 = vector.load %arg3[%c0_39, %c9, %c0_40] : memref<8x16x32xf32, #tpu.memory_space<vmem>>, vector<8x1x32xf32>
    %85 = vector.broadcast %84 : vector<8x1x32xf32> to vector<8x8x32xf32>
    %86 = arith.mulf %1, %85 : vector<8x8x32xf32>
    %cst_41 = arith.constant dense<0.000000e+00> : vector<8x8xf32>
    %87 = vector.multi_reduction <add>, %86, %cst_41 [2] : vector<8x8x32xf32> to vector<8x8xf32>
    %c9_42 = arith.constant 9 : index
    %88 = memref.load %arg4[%c9_42] : memref<16xf32, #tpu.memory_space<smem>>
    %89 = math.tanh %87 : vector<8x8xf32>
    %90 = vector.broadcast %88 : f32 to vector<8x8xf32>
    %91 = arith.mulf %90, %89 : vector<8x8xf32>
    %92 = arith.addf %83, %91 : vector<8x8xf32>
    %c0_43 = arith.constant 0 : index
    %c10 = arith.constant 10 : index
    %c0_44 = arith.constant 0 : index
    %93 = vector.load %arg3[%c0_43, %c10, %c0_44] : memref<8x16x32xf32, #tpu.memory_space<vmem>>, vector<8x1x32xf32>
    %94 = vector.broadcast %93 : vector<8x1x32xf32> to vector<8x8x32xf32>
    %95 = arith.mulf %1, %94 : vector<8x8x32xf32>
    %cst_45 = arith.constant dense<0.000000e+00> : vector<8x8xf32>
    %96 = vector.multi_reduction <add>, %95, %cst_45 [2] : vector<8x8x32xf32> to vector<8x8xf32>
    %c10_46 = arith.constant 10 : index
    %97 = memref.load %arg4[%c10_46] : memref<16xf32, #tpu.memory_space<smem>>
    %98 = math.tanh %96 : vector<8x8xf32>
    %99 = vector.broadcast %97 : f32 to vector<8x8xf32>
    %100 = arith.mulf %99, %98 : vector<8x8xf32>
    %101 = arith.addf %92, %100 : vector<8x8xf32>
    %c0_47 = arith.constant 0 : index
    %c11 = arith.constant 11 : index
    %c0_48 = arith.constant 0 : index
    %102 = vector.load %arg3[%c0_47, %c11, %c0_48] : memref<8x16x32xf32, #tpu.memory_space<vmem>>, vector<8x1x32xf32>
    %103 = vector.broadcast %102 : vector<8x1x32xf32> to vector<8x8x32xf32>
    %104 = arith.mulf %1, %103 : vector<8x8x32xf32>
    %cst_49 = arith.constant dense<0.000000e+00> : vector<8x8xf32>
    %105 = vector.multi_reduction <add>, %104, %cst_49 [2] : vector<8x8x32xf32> to vector<8x8xf32>
    %c11_50 = arith.constant 11 : index
    %106 = memref.load %arg4[%c11_50] : memref<16xf32, #tpu.memory_space<smem>>
    %107 = math.tanh %105 : vector<8x8xf32>
    %108 = vector.broadcast %106 : f32 to vector<8x8xf32>
    %109 = arith.mulf %108, %107 : vector<8x8xf32>
    %110 = arith.addf %101, %109 : vector<8x8xf32>
    %c0_51 = arith.constant 0 : index
    %c12 = arith.constant 12 : index
    %c0_52 = arith.constant 0 : index
    %111 = vector.load %arg3[%c0_51, %c12, %c0_52] : memref<8x16x32xf32, #tpu.memory_space<vmem>>, vector<8x1x32xf32>
    %112 = vector.broadcast %111 : vector<8x1x32xf32> to vector<8x8x32xf32>
    %113 = arith.mulf %1, %112 : vector<8x8x32xf32>
    %cst_53 = arith.constant dense<0.000000e+00> : vector<8x8xf32>
    %114 = vector.multi_reduction <add>, %113, %cst_53 [2] : vector<8x8x32xf32> to vector<8x8xf32>
    %c12_54 = arith.constant 12 : index
    %115 = memref.load %arg4[%c12_54] : memref<16xf32, #tpu.memory_space<smem>>
    %116 = math.tanh %114 : vector<8x8xf32>
    %117 = vector.broadcast %115 : f32 to vector<8x8xf32>
    %118 = arith.mulf %117, %116 : vector<8x8xf32>
    %119 = arith.addf %110, %118 : vector<8x8xf32>
    %c0_55 = arith.constant 0 : index
    %c13 = arith.constant 13 : index
    %c0_56 = arith.constant 0 : index
    %120 = vector.load %arg3[%c0_55, %c13, %c0_56] : memref<8x16x32xf32, #tpu.memory_space<vmem>>, vector<8x1x32xf32>
    %121 = vector.broadcast %120 : vector<8x1x32xf32> to vector<8x8x32xf32>
    %122 = arith.mulf %1, %121 : vector<8x8x32xf32>
    %cst_57 = arith.constant dense<0.000000e+00> : vector<8x8xf32>
    %123 = vector.multi_reduction <add>, %122, %cst_57 [2] : vector<8x8x32xf32> to vector<8x8xf32>
    %c13_58 = arith.constant 13 : index
    %124 = memref.load %arg4[%c13_58] : memref<16xf32, #tpu.memory_space<smem>>
    %125 = math.tanh %123 : vector<8x8xf32>
    %126 = vector.broadcast %124 : f32 to vector<8x8xf32>
    %127 = arith.mulf %126, %125 : vector<8x8xf32>
    %128 = arith.addf %119, %127 : vector<8x8xf32>
    %c0_59 = arith.constant 0 : index
    %c14 = arith.constant 14 : index
    %c0_60 = arith.constant 0 : index
    %129 = vector.load %arg3[%c0_59, %c14, %c0_60] : memref<8x16x32xf32, #tpu.memory_space<vmem>>, vector<8x1x32xf32>
    %130 = vector.broadcast %129 : vector<8x1x32xf32> to vector<8x8x32xf32>
    %131 = arith.mulf %1, %130 : vector<8x8x32xf32>
    %cst_61 = arith.constant dense<0.000000e+00> : vector<8x8xf32>
    %132 = vector.multi_reduction <add>, %131, %cst_61 [2] : vector<8x8x32xf32> to vector<8x8xf32>
    %c14_62 = arith.constant 14 : index
    %133 = memref.load %arg4[%c14_62] : memref<16xf32, #tpu.memory_space<smem>>
    %134 = math.tanh %132 : vector<8x8xf32>
    %135 = vector.broadcast %133 : f32 to vector<8x8xf32>
    %136 = arith.mulf %135, %134 : vector<8x8xf32>
    %137 = arith.addf %128, %136 : vector<8x8xf32>
    %c0_63 = arith.constant 0 : index
    %c15 = arith.constant 15 : index
    %c0_64 = arith.constant 0 : index
    %138 = vector.load %arg3[%c0_63, %c15, %c0_64] : memref<8x16x32xf32, #tpu.memory_space<vmem>>, vector<8x1x32xf32>
    %139 = vector.broadcast %138 : vector<8x1x32xf32> to vector<8x8x32xf32>
    %140 = arith.mulf %1, %139 : vector<8x8x32xf32>
    %cst_65 = arith.constant dense<0.000000e+00> : vector<8x8xf32>
    %141 = vector.multi_reduction <add>, %140, %cst_65 [2] : vector<8x8x32xf32> to vector<8x8xf32>
    %c15_66 = arith.constant 15 : index
    %142 = memref.load %arg4[%c15_66] : memref<16xf32, #tpu.memory_space<smem>>
    %143 = math.tanh %141 : vector<8x8xf32>
    %144 = vector.broadcast %142 : f32 to vector<8x8xf32>
    %145 = arith.mulf %144, %143 : vector<8x8xf32>
    %146 = arith.addf %137, %145 : vector<8x8xf32>
    %c0_67 = arith.constant 0 : index
    %c0_68 = arith.constant 0 : index
    %147 = vector.load %arg5[%c0_67, %c0_68] : memref<8x8xf32, #tpu.memory_space<vmem>>, vector<8x8xf32>
    tpu.vector_store %arg5[%c0_67, %c0_68], %146 {strides = array<i32>} : memref<8x8xf32, #tpu.memory_space<vmem>>, vector<8x8xf32>,
    return
  }
  func.func @transform_0(%arg0: i32, %arg1: i32) -> (i32, i32, i32) {
    %c0_i32 = arith.constant 0 : i32
    %c0_i32_0 = arith.constant 0 : i32
    return %arg0, %arg1, %c0_i32 : i32, i32, i32
  }
  func.func @transform_1(%arg0: i32, %arg1: i32) -> (i32, i32, i32) {
    %c0_i32 = arith.constant 0 : i32
    %c0_i32_0 = arith.constant 0 : i32
    %c0_i32_1 = arith.constant 0 : i32
    return %arg0, %c0_i32, %c0_i32_0 : i32, i32, i32
  }
  func.func @transform_2(%arg0: i32, %arg1: i32) -> i32 {
    %c0_i32 = arith.constant 0 : i32
    %c0_i32_0 = arith.constant 0 : i32
    return %c0_i32 : i32
  }
  func.func @transform_3(%arg0: i32, %arg1: i32) -> (i32, i32) {
    %c0_i32 = arith.constant 0 : i32
    return %arg0, %arg1 : i32, i32
  }
}

</mosaic_0001>

<bundles_post_ra>
// kernel: tpu_custom_call.1
= control target key start
LH: loop header
LB: loop body
LE: loop exit
PB: predicated region body
PF: predicated region fallthrough
CT: control target
= control target key end

     0   :  { %8 = vsyncpa [#allocation3], 0  ;;  %s2497_s0 = inlined_call_operand.hbm [shape: bf16[8,8,32], index: 0, kind: input, shape index: {}]   ;;  %s2498_s1 = inlined_call_operand.hbm [shape: f32[8,16,32], index: 1, kind: input, shape index: {}]   ;;  %s2499_s2 = inlined_call_operand.vmem [shape: f32[16], index: 2, kind: input, shape index: {}]   ;;  %s2500_s3 = inlined_call_operand.hbm [shape: f32[8,8], index: 3, kind: output, shape index: {}]  }
   0x1   :  { %9 = vsyncpa [#allocation7], 0 }
   0x2   :  { %10 = vsyncpa [#allocation5], 0 }
   0x3   :  { %11 = vsyncpa [#allocation4], 0  ;;  %s16_s14 = sshll.u32 %s2497_s0, 4  ;;  %s1833_s15 = smov [#allocation2]   ;;  %s17_s14 = int_to_ptr.hbm [resolvable:$true] %s16_s14 }
   0x4   :  { %s18_s16 = sshll.u32 %s1833_s15, 4  ;;  %s29_s19 = sshll.u32 %s2498_s1, 4  ;;  %s19_s16 = int_to_ptr.vmem [resolvable:$true] %s18_s16  ;;  %s30_s19 = int_to_ptr.hbm [resolvable:$true] %s29_s19 }
   0x5   :  { %s1834_s20 = smov 64   ;;  %s1835_s21 = smov 4  }
   0x6   :  { %24 = dma.hbm_to_vmem [thread:$0]  %s17_s14, 512, %s19_s16, [#allocation3], %s1834_s20, %s1834_s20, %s1835_s21  }
   0x7   :  { %s1836_s22 = smov [#allocation6]   ;;  %s1837_s24 = smov 128  }
   0x8   :  { %s31_s23 = sshll.u32 %s1836_s22, 4  ;;  %s1838_s25 = smov 8   ;;  %s32_s23 = int_to_ptr.vmem [resolvable:$true] %s31_s23 }
   0x9   :  { %37 = dma.hbm_to_vmem [thread:$0]  %s30_s19, 2048, %s32_s23, [#allocation7], %s1837_s24, %s1837_s24, %s1838_s25  }
   0xa   :  { %s43_s27 = sshll.u32 %s2499_s2, 4  ;;  %s1839_s28 = smov [#allocation8]   ;;  %s44_s27 = int_to_ptr.vmem [resolvable:$true] %s43_s27 }
   0xb   :  { %46 = dma.vmem_to_smem %s44_s27, 16, %s1839_s28, [#allocation5]  }
   0xc   :  { %1825 = dma.done.wait [#allocation3], 512  }
   0xd   :  { %1826 = vsyncadd [#allocation3], 4294966784 }
   0xe   :  { %1827 = dma.done.wait [#allocation7], 2048  }
   0xf   :  { %1828 = vsyncadd [#allocation7], 4294965248 }
  0x10   :  { %1829 = dma.done.wait [#allocation5], 16  }
  0x11   :  { %1830 = vsyncadd [#allocation5], 4294967280 }
  0x12   :  { %59 = sfence }
  0x13   :  { %v1347_v0 = vld [vmem:[#allocation2 + $0x10] sm:$0xff]   ;;  %v1357_v1 = vld [vmem:[#allocation6 + $0x40] ss:$0 sm:$0xff]  ;;  %v1346_v3 = vld [vmem:[#allocation2 + $0x8] sm:$0xff]   ;;  %vm100_vm0 = vcmask 261120   ;;  %s125_s1 = sld [smem:[#allocation8]] }
  0x14   :  { %v1870_v2 = vunpack.c.l.bf16 %v1347_v0  ;;  %v1358_v4 = vld [vmem:[#allocation6 + $0x20] ss:$0 sm:$0xff]  ;;  %v1872_v5 = vunpack.c.l.bf16 %v1346_v3  ;;  %v1877_v10 = vunpack.c.h.bf16 %v1347_v0  ;;  %v1360_v11 = vld [vmem:[#allocation6 + $0x50] ss:$0 sm:$0xff]  ;;  %v1880_v13 = vunpack.c.h.bf16 %v1346_v3  ;;  %v1348_v23 = vld [vmem:[#allocation2 + $0x18] sm:$0xff]   ;;  %s1315_s2 = sld [smem:[#allocation8 + $0x1]] }
  0x15   :  { %v1331_v6 = vld [vmem:[#allocation2] sm:$0xff]   ;;  %v1361_v14 = vld [vmem:[#allocation6 + $0x30] ss:$0 sm:$0xff]  ;;  %v1892_v27 = vunpack.c.h.bf16 %v1348_v23  ;;  %v1896_v31 = vunpack.c.l.bf16 %v1348_v23  ;;  %v1367_v39 = vld [vmem:[#allocation6 + $0x31] ss:$0 sm:$0xff]  ;;  %s2032_s29 = sld [smem:[#allocation8 + $0x2]] }
  0x16   :  { %v1359_v7 = vld [vmem:[#allocation6] ss:$0 sm:$0xff]  ;;  %v96_v8 = vmul.f32 %v1357_v1, %v1870_v2  ;;  %v1875_v9 = vunpack.c.l.bf16 %v1331_v6  ;;  %v94_v12 = vmul.f32 %v1358_v4, %v1872_v5  ;;  %v1884_v17 = vunpack.c.h.bf16 %v1331_v6  ;;  %v1362_v18 = vld [vmem:[#allocation6 + $0x10] ss:$0 sm:$0xff]  ;;  %v1364_v28 = vld [vmem:[#allocation6 + $0x1] ss:$0 sm:$0xff] }
  0x17   :  { %v97_v21 = vmul.f32 %v1360_v11, %v1877_v10  ;;  %v95_v22 = vmul.f32 %v1361_v14, %v1880_v13  ;;  %v1363_v25 = vld [vmem:[#allocation6 + $0x70] ss:$0 sm:$0xff]  ;;  %v1365_v32 = vld [vmem:[#allocation6 + $0x60] ss:$0 sm:$0xff]  ;;  %v1366_v38 = vld [vmem:[#allocation6 + $0x21] ss:$0 sm:$0xff]  ;;  %v170_v42 = vmul.f32 %v1367_v39, %v1880_v13 }
  0x18   :  { %v113_v15 = vsel %vm100_vm0, %v96_v8, 0.0  ;;  %v92_v16 = vmul.f32 %v1359_v7, %v1875_v9  ;;  %v107_v19 = vsel %vm100_vm0, %v94_v12, 0.0  ;;  %v93_v24 = vmul.f32 %v1362_v18, %v1884_v17  ;;  %v1368_v40 = vld [vmem:[#allocation6 + $0x11] ss:$0 sm:$0xff]  ;;  %v1370_v46 = vld [vmem:[#allocation6 + $0x61] ss:$0 sm:$0xff] }
  0x19   :  { %114 = vadd.xlane.f32.xlu2 %v113_v15  ;;  %108 = vadd.xlane.f32.xlu1 %v107_v19  ;;  %v116_v26 = vsel %vm100_vm0, %v97_v21, 0.0  ;;  %v110_v29 = vsel %vm100_vm0, %v95_v22, 0.0  ;;  %v99_v33 = vmul.f32 %v1363_v25, %v1892_v27  ;;  %v167_v34 = vmul.f32 %v1364_v28, %v1875_v9  ;;  %v1369_v45 = vld [vmem:[#allocation6 + $0x51] ss:$0 sm:$0xff]  ;;  %v1371_v48 = vld [vmem:[#allocation6 + $0x41] ss:$0 sm:$0xff] }
  0x1a   :  { %v101_v20 = vsel %vm100_vm0, %v92_v16, 0.0  ;;  %v104_v30 = vsel %vm100_vm0, %v93_v24, 0.0  ;;  %v98_v35 = vmul.f32 %v1365_v32, %v1896_v31  ;;  %v169_v43 = vmul.f32 %v1366_v38, %v1872_v5  ;;  %v1372_v54 = vld [vmem:[#allocation6 + $0x2] ss:$0 sm:$0xff]  ;;  %v1373_v57 = vld [vmem:[#allocation6 + $0x12] ss:$0 sm:$0xff] }
  0x1b   :  { %102 = vadd.xlane.f32.xlu0 %v101_v20  ;;  %v122_v36 = vsel %vm100_vm0, %v99_v33, 0.0  ;;  %v175_v37 = vsel %vm100_vm0, %v167_v34, 0.0  ;;  %v168_v44 = vmul.f32 %v1368_v40, %v1884_v17  ;;  %v184_v47 = vsel %vm100_vm0, %v170_v42, 0.0  ;;  %v1374_v58 = vld [vmem:[#allocation6 + $0x71] ss:$0 sm:$0xff]  ;;  %s1317_s30 = sld [smem:[#allocation8 + $0x3]] }
  0x1c   :  { %v119_v41 = vsel %vm100_vm0, %v98_v35, 0.0  ;;  %v181_v49 = vsel %vm100_vm0, %v169_v43, 0.0  ;;  %v172_v51 = vmul.f32 %v1369_v45, %v1877_v10  ;;  %v173_v52 = vmul.f32 %v1370_v46, %v1896_v31  ;;  %v1376_v61 = vld [vmem:[#allocation6 + $0x42] ss:$0 sm:$0xff]  ;;  %v1375_v0 = vld [vmem:[#allocation6 + $0x32] ss:$0 sm:$0xff] }
  0x1d   :  { %v178_v50 = vsel %vm100_vm0, %v168_v44, 0.0  ;;  %v171_v53 = vmul.f32 %v1371_v48, %v1870_v2  ;;  %v242_v60 = vmul.f32 %v1373_v57, %v1884_v17  ;;  %v241_v62 = vmul.f32 %v1372_v54, %v1875_v9  ;;  %v1377_v4 = vld [vmem:[#allocation6 + $0x22] ss:$0 sm:$0xff]  ;;  %v1379_v15 = vld [vmem:[#allocation6 + $0x72] ss:$0 sm:$0xff]  ;;  %s1318_s4 = sld [smem:[#allocation8 + $0x4]] }
  0x1e   :  { %v190_v55 = vsel %vm100_vm0, %v172_v51, 0.0  ;;  %v193_v56 = vsel %vm100_vm0, %v173_v52, 0.0  ;;  %v174_v63 = vmul.f32 %v1374_v58, %v1892_v27  ;;  %v245_v3 = vmul.f32 %v1376_v61, %v1870_v2  ;;  %v1378_v14 = vld [vmem:[#allocation6 + $0x62] ss:$0 sm:$0xff]  ;;  %v1380_v16 = vld [vmem:[#allocation6 + $0x52] ss:$0 sm:$0xff] }
  0x1f   :  { %v187_v59 = vsel %vm100_vm0, %v171_v53, 0.0  ;;  %v252_v1 = vsel %vm100_vm0, %v242_v60, 0.0  ;;  %v249_v6 = vsel %vm100_vm0, %v241_v62, 0.0  ;;  %v244_v11 = vmul.f32 %v1375_v0, %v1880_v13  ;;  %v1381_v28 = vld [vmem:[#allocation6 + $0x13] ss:$0 sm:$0xff]  ;;  %s1319_s5 = sld [smem:[#allocation8 + $0x5]] }
  0x20   :  { %v196_v7 = vsel %vm100_vm0, %v174_v63, 0.0  ;;  %v261_v8 = vsel %vm100_vm0, %v245_v3, 0.0  ;;  %v243_v12 = vmul.f32 %v1377_v4, %v1872_v5  ;;  %v247_v20 = vmul.f32 %v1378_v14, %v1896_v31  ;;  %v1385_v35 = vld [vmem:[#allocation6 + $0x53] ss:$0 sm:$0xff]  ;;  %v1388_v44 = vld [vmem:[#allocation6 + $0x4] ss:$0 sm:$0xff] }
  0x21   :  { %117 = vadd.xlane.f32.xlu2 %v116_v26  ;;  %111 = vadd.xlane.f32.xlu1 %v110_v29  ;;  %v258_v18 = vsel %vm100_vm0, %v244_v11, 0.0  ;;  %v248_v21 = vmul.f32 %v1379_v15, %v1892_v27  ;;  %v246_v22 = vmul.f32 %v1380_v16, %v1877_v10  ;;  %v1382_v26 = vld [vmem:[#allocation6 + $0x23] ss:$0 sm:$0xff]  ;;  %v316_v32 = vmul.f32 %v1381_v28, %v1884_v17  ;;  %v1386_v39 = vld [vmem:[#allocation6 + $0x33] ss:$0 sm:$0xff]  ;;  %s1320_s6 = sld [smem:[#allocation8 + $0x6]] }
  0x22   :  { %v255_v19 = vsel %vm100_vm0, %v243_v12, 0.0  ;;  %v267_v23 = vsel %vm100_vm0, %v247_v20, 0.0  ;;  %v1383_v29 = vld [vmem:[#allocation6 + $0x3] ss:$0 sm:$0xff]  ;;  %v320_v40 = vmul.f32 %v1385_v35, %v1877_v10  ;;  %v318_v42 = vmul.f32 %v1386_v39, %v1880_v13  ;;  %v1387_v46 = vld [vmem:[#allocation6 + $0x73] ss:$0 sm:$0xff] }
  0x23   :  { %105 = vadd.xlane.f32.xlu0 %v104_v30  ;;  %v270_v24 = vsel %vm100_vm0, %v248_v21, 0.0  ;;  %v264_v25 = vsel %vm100_vm0, %v246_v22, 0.0  ;;  %v317_v30 = vmul.f32 %v1382_v26, %v1872_v5  ;;  %v315_v33 = vmul.f32 %v1383_v29, %v1875_v9  ;;  %v1389_v48 = vld [vmem:[#allocation6 + $0x63] ss:$0 sm:$0xff]  ;;  %v1391_v53 = vld [vmem:[#allocation6 + $0x34] ss:$0 sm:$0xff] }
  0x24   :  { %v338_v43 = vsel %vm100_vm0, %v320_v40, 0.0  ;;  %v321_v51 = vmul.f32 %v1389_v48, %v1896_v31  ;;  %v1392_v57 = vld [vmem:[#allocation6 + $0x14] ss:$0 sm:$0xff]  ;;  %v392_v58 = vmul.f32 %v1391_v53, %v1880_v13  ;;  %v1394_v62 = vld [vmem:[#allocation6 + $0x64] ss:$0 sm:$0xff]  ;;  %s1321_s7 = sld [smem:[#allocation8 + $0x7]] }
  0x25   :  { %v329_v34 = vsel %vm100_vm0, %v317_v30, 0.0  ;;  %v323_v38 = vsel %vm100_vm0, %v315_v33, 0.0  ;;  %v390_v60 = vmul.f32 %v1392_v57, %v1884_v17  ;;  %v1393_v0 = vld [vmem:[#allocation6 + $0x54] ss:$0 sm:$0xff]  ;;  %v1395_v3 = vld [vmem:[#allocation6 + $0x44] ss:$0 sm:$0xff]  ;;  %v395_v4 = vmul.f32 %v1394_v62, %v1896_v31 }
  0x26   :  { %v406_v61 = vsel %vm100_vm0, %v392_v58, 0.0  ;;  %v1397_v11 = vld [vmem:[#allocation6 + $0x15] ss:$0 sm:$0xff]  ;;  %v1396_v14 = vld [vmem:[#allocation6 + $0x5] ss:$0 sm:$0xff]  ;;  %s1322_s8 = sld [smem:[#allocation8 + $0x8]] }
  0x27   :  { %v1398_v16 = vld [vmem:[#allocation6 + $0x74] ss:$0 sm:$0xff]  ;;  %v1400_v22 = vld [vmem:[#allocation6 + $0x45] ss:$0 sm:$0xff]  ;;  %v1403_v33 = vld [vmem:[#allocation6 + $0x75] ss:$0 sm:$0xff] }
  0x28   :  { %v396_v20 = vmul.f32 %v1398_v16, %v1892_v27  ;;  %v1401_v26 = vld [vmem:[#allocation6 + $0x25] ss:$0 sm:$0xff]  ;;  %v467_v28 = vmul.f32 %v1400_v22, %v1870_v2  ;;  %v1409_v57 = vld [vmem:[#allocation6 + $0x56] ss:$0 sm:$0xff]  ;;  %v2000_v16 = vstv %s125_s1  ;;  %s1323_s9 = sld [smem:[#allocation8 + $0x9]]  ;;  %vm1279_vm1 = vcmask 1041409  }
  0x29   :  { %176 = vadd.xlane.f32.xlu2 %v175_v37  ;;  %123 = vadd.xlane.f32.xlu1 %v122_v36  ;;  %v326_v36 = vsel %vm100_vm0, %v316_v32, 0.0  ;;  %v1384_v37 = vld [vmem:[#allocation6 + $0x43] ss:$0 sm:$0xff]  ;;  %v465_v30 = vmul.f32 %v1401_v26, %v1872_v5  ;;  %v1402_v35 = vld [vmem:[#allocation6 + $0x65] ss:$0 sm:$0xff]  ;;  %v542_v62 = vmul.f32 %v1409_v57, %v1877_v10  ;;  %s1324_s10 = sld [smem:[#allocation8 + $0xa]] }
  0x2a   :  { %v483_v32 = vsel %vm100_vm0, %v467_v28, 0.0  ;;  %v469_v39 = vmul.f32 %v1402_v35, %v1896_v31  ;;  %v1415_v28 = vld [vmem:[#allocation6 + $0x37] ss:$0 sm:$0xff]  ;;  %v1418_v57 = vld [vmem:[#allocation6 + $0x67] ss:$0 sm:$0xff]  ;;  %s1325_s11 = sld [smem:[#allocation8 + $0xb]] }
  0x2b   :  { %120 = vadd.xlane.f32.xlu0 %v119_v41  ;;  %v319_v41 = vmul.f32 %v1384_v37, %v1870_v2  ;;  %v1404_v37 = vld [vmem:[#allocation6 + $0x55] ss:$0 sm:$0xff]  ;;  %s1326_s12 = sld [smem:[#allocation8 + $0xc]]  ;;  %vm1281_vm2 = vcmask 1042434   ;;  %vm1283_vm3 = vcmask 1043459   ;;  %vm1285_vm4 = vcmask 1044484  }
  0x2c   :  { %s1327_s13 = sld [smem:[#allocation8 + $0xd]]  ;;  %vm1287_vm5 = vcmask 1045509   ;;  %vm1289_vm6 = vcmask 1046534   ;;  %s1840_s16 = smov [#allocation9]   ;;  %vm1291_vm7 = vcmask 1047559   ;;  %vm1294_vm8 = vcmask 64512  }
  0x2d   :  { %v335_v45 = vsel %vm100_vm0, %v319_v41, 0.0  ;;  %v468_v41 = vmul.f32 %v1404_v37, %v1877_v10  ;;  %v1416_v37 = vld [vmem:[#allocation6 + $0x17] ss:$0 sm:$0xff]  ;;  %s1328_s14 = sld [smem:[#allocation8 + $0xe]]  ;;  %s1301_s17 = sshll.u32 %s1840_s16, 4  ;;  %s1302_s17 = int_to_ptr.vmem [resolvable:$true] %s1301_s17 }
  0x2e   :  { %s1329_s15 = sld [smem:[#allocation8 + $0xf]]  ;;  %s1303_s20 = sshll.u32 %s2500_s3, 4  ;;  %s1304_s20 = int_to_ptr.hbm [resolvable:$true] %s1303_s20 }
  0x2f   :  { %v486_v48 = vsel %vm100_vm0, %v468_v41, 0.0 }
  0x31   :  { %185 = vadd.xlane.f32.xlu2 %v184_v47  ;;  %182 = vadd.xlane.f32.xlu1 %v181_v49  ;;  %v332_v47 = vsel %vm100_vm0, %v318_v42, 0.0  ;;  %v389_v49 = vmul.f32 %v1388_v44, %v1875_v9 }
  0x33   :  { %179 = vadd.xlane.f32.xlu0 %v178_v50  ;;  %v322_v50 = vmul.f32 %v1387_v46, %v1892_v27  ;;  %v397_v52 = vsel %vm100_vm0, %v389_v49, 0.0  ;;  %v489_v46 = vsel %vm100_vm0, %v469_v39, 0.0  ;;  %v1407_v49 = vld [vmem:[#allocation6 + $0x6] ss:$0 sm:$0xff]  ;;  %v614_v39 = vmul.f32 %v1415_v28, %v1880_v13 }
  0x34   :  { %v537_v53 = vmul.f32 %v1407_v49, %v1875_v9 }
  0x35   :  { %v344_v54 = vsel %vm100_vm0, %v322_v50, 0.0 }
  0x39   :  { %194 = vadd.xlane.f32.xlu2 %v193_v56  ;;  %191 = vadd.xlane.f32.xlu1 %v190_v55  ;;  %v1390_v55 = vld [vmem:[#allocation6 + $0x24] ss:$0 sm:$0xff]  ;;  %v341_v56 = vsel %vm100_vm0, %v321_v51, 0.0 }
  0x3b   :  { %188 = vadd.xlane.f32.xlu0 %v187_v59  ;;  %v391_v59 = vmul.f32 %v1390_v55, %v1872_v5 }
  0x3d   :  { %v403_v63 = vsel %vm100_vm0, %v391_v59, 0.0  ;;  %v1408_v59 = vld [vmem:[#allocation6 + $0x46] ss:$0 sm:$0xff] }
  0x41   :  { %253 = vadd.xlane.f32.xlu2 %v252_v1  ;;  %250 = vadd.xlane.f32.xlu1 %v249_v6  ;;  %v400_v1 = vsel %vm100_vm0, %v390_v60, 0.0  ;;  %v394_v6 = vmul.f32 %v1393_v0, %v1877_v10  ;;  %v545_v60 = vsel %vm100_vm0, %v537_v53, 0.0  ;;  %v628_v53 = vsel %vm100_vm0, %v614_v39, 0.0 }
  0x43   :  { %197 = vadd.xlane.f32.xlu0 %v196_v7  ;;  %v393_v7 = vmul.f32 %v1395_v3, %v1870_v2  ;;  %v412_v12 = vsel %vm100_vm0, %v394_v6, 0.0  ;;  %v560_v6 = vsel %vm100_vm0, %v542_v62, 0.0 }
  0x45   :  { %v409_v15 = vsel %vm100_vm0, %v393_v7, 0.0  ;;  %v1412_v7 = vld [vmem:[#allocation6 + $0x7] ss:$0 sm:$0xff] }
  0x49   :  { %262 = vadd.xlane.f32.xlu2 %v261_v8  ;;  %259 = vadd.xlane.f32.xlu1 %v258_v18  ;;  %v415_v8 = vsel %vm100_vm0, %v395_v4, 0.0  ;;  %v464_v18 = vmul.f32 %v1397_v11, %v1884_v17  ;;  %v1411_v11 = vld [vmem:[#allocation6 + $0x76] ss:$0 sm:$0xff] }
  0x4b   :  { %256 = vadd.xlane.f32.xlu0 %v255_v19  ;;  %v463_v19 = vmul.f32 %v1396_v14, %v1875_v9  ;;  %v474_v21 = vsel %vm100_vm0, %v464_v18, 0.0  ;;  %v1413_v14 = vld [vmem:[#allocation6 + $0x66] ss:$0 sm:$0xff]  ;;  %v2002_v18 = vstv %s1315_s2 }
  0x51   :  { %271 = vadd.xlane.f32.xlu2 %v270_v24  ;;  %268 = vadd.xlane.f32.xlu1 %v267_v23  ;;  %v471_v23 = vsel %vm100_vm0, %v463_v19, 0.0  ;;  %v1399_v24 = vld [vmem:[#allocation6 + $0x35] ss:$0 sm:$0xff]  ;;  %v611_v19 = vmul.f32 %v1412_v7, %v1875_v9 }
  0x52   :  { %v466_v29 = vmul.f32 %v1399_v24, %v1880_v13 }
  0x53   :  { %265 = vadd.xlane.f32.xlu0 %v264_v25  ;;  %v418_v25 = vsel %vm100_vm0, %v396_v20, 0.0 }
  0x59   :  { %330 = vadd.xlane.f32.xlu2 %v329_v34  ;;  %327 = vadd.xlane.f32.xlu1 %v326_v36  ;;  %v480_v34 = vsel %vm100_vm0, %v466_v29, 0.0  ;;  %v477_v36 = vsel %vm100_vm0, %v465_v30, 0.0 }
  0x5b   :  { %324 = vadd.xlane.f32.xlu0 %v323_v38  ;;  %v470_v38 = vmul.f32 %v1403_v33, %v1892_v27 }
  0x5d   :  { %v492_v44 = vsel %vm100_vm0, %v470_v38, 0.0 }
  0x61   :  { %339 = vadd.xlane.f32.xlu2 %v338_v43  ;;  %336 = vadd.xlane.f32.xlu1 %v335_v45  ;;  %v1406_v45 = vld [vmem:[#allocation6 + $0x26] ss:$0 sm:$0xff] }
  0x62   :  { %v539_v50 = vmul.f32 %v1406_v45, %v1872_v5 }
  0x63   :  { %333 = vadd.xlane.f32.xlu0 %v332_v47  ;;  %v1405_v47 = vld [vmem:[#allocation6 + $0x16] ss:$0 sm:$0xff] }
  0x64   :  { %v538_v51 = vmul.f32 %v1405_v47, %v1884_v17 }
  0x66   :  { %v548_v58 = vsel %vm100_vm0, %v538_v51, 0.0 }
  0x69   :  { %398 = vadd.xlane.f32.xlu2 %v397_v52  ;;  %345 = vadd.xlane.f32.xlu1 %v344_v54 }
  0x6b   :  { %342 = vadd.xlane.f32.xlu0 %v341_v56  ;;  %v551_v56 = vsel %vm100_vm0, %v539_v50, 0.0 }
  0x71   :  { %407 = vadd.xlane.f32.xlu2 %v406_v61  ;;  %404 = vadd.xlane.f32.xlu1 %v403_v63  ;;  %v1410_v61 = vld [vmem:[#allocation6 + $0x36] ss:$0 sm:$0xff]  ;;  %v541_v63 = vmul.f32 %v1408_v59, %v1870_v2 }
  0x73   :  { %401 = vadd.xlane.f32.xlu0 %v400_v1  ;;  %v540_v1 = vmul.f32 %v1410_v61, %v1880_v13 }
  0x79   :  { %416 = vadd.xlane.f32.xlu2 %v415_v8  ;;  %413 = vadd.xlane.f32.xlu1 %v412_v12  ;;  %v557_v8 = vsel %vm100_vm0, %v541_v63, 0.0  ;;  %v554_v12 = vsel %vm100_vm0, %v540_v1, 0.0 }
  0x7b   :  { %410 = vadd.xlane.f32.xlu0 %v409_v15 }
  0x81   :  { %475 = vadd.xlane.f32.xlu2 %v474_v21  ;;  %472 = vadd.xlane.f32.xlu1 %v471_v23  ;;  %v544_v21 = vmul.f32 %v1411_v11, %v1892_v27 }
  0x83   :  { %419 = vadd.xlane.f32.xlu0 %v418_v25  ;;  %v543_v25 = vmul.f32 %v1413_v14, %v1896_v31  ;;  %v566_v33 = vsel %vm100_vm0, %v544_v21, 0.0 }
  0x89   :  { %484 = vadd.xlane.f32.xlu2 %v483_v32  ;;  %481 = vadd.xlane.f32.xlu1 %v480_v34  ;;  %v619_v32 = vsel %vm100_vm0, %v611_v19, 0.0  ;;  %v1414_v34 = vld [vmem:[#allocation6 + $0x27] ss:$0 sm:$0xff] }
  0x8b   :  { %478 = vadd.xlane.f32.xlu0 %v477_v36  ;;  %v563_v36 = vsel %vm100_vm0, %v543_v25, 0.0  ;;  %v1421_v25 = vld [vmem:[#allocation6 + $0x18] ss:$0 sm:$0xff] }
  0x8c   :  { %v1978_v40 = vpop.xlane.xlu2 %114  ;;  %v109_v42 = vpop.xlane.xlu1 %108  ;;  %v686_v39 = vmul.f32 %v1421_v25, %v1884_v17 }
  0x8e   :  { %v103_v43 = vpop.xlane.xlu0 %102 }
  0x8f   :  { %1485 = vtanh.f32 %v103_v43  ;;  %v613_v43 = vmul.f32 %v1414_v34, %v1872_v5  ;;  %v1420_v34 = vld [vmem:[#allocation6 + $0x8] ss:$0 sm:$0xff] }
  0x91   :  { %493 = vadd.xlane.f32.xlu2 %v492_v44  ;;  %490 = vadd.xlane.f32.xlu1 %v489_v46  ;;  %v625_v59 = vsel %vm100_vm0, %v613_v43, 0.0  ;;  %v685_v43 = vmul.f32 %v1420_v34, %v1875_v9 }
  0x93   :  { %487 = vadd.xlane.f32.xlu0 %v486_v48  ;;  %v612_v48 = vmul.f32 %v1416_v37, %v1884_v17  ;;  %v1422_v37 = vld [vmem:[#allocation6 + $0x77] ss:$0 sm:$0xff] }
  0x94   :  { %v1986_v52 = vpop.xlane.xlu2 %117  ;;  %v112_v54 = vpop.xlane.xlu1 %111 }
  0x95   :  { %v1486_v15 = vpop.eup %1485  ;;  %v622_v63 = vsel %vm100_vm0, %v612_v48, 0.0 }
  0x96   :  { %v106_v55 = vpop.xlane.xlu0 %105  ;;  %v135_v22 = vmul.f32 %v1486_v15, %v2000_v16 }
  0x99   :  { %552 = vadd.xlane.f32.xlu2 %v551_v56  ;;  %549 = vadd.xlane.f32.xlu1 %v548_v58 }
  0x9b   :  { %546 = vadd.xlane.f32.xlu0 %v545_v60  ;;  %v1417_v60 = vld [vmem:[#allocation6 + $0x57] ss:$0 sm:$0xff] }
  0x9c   :  { %v177_v0 = vpop.xlane.xlu2 %176  ;;  %v1995_v3 = vpop.xlane.xlu1 %123 }
  0x9d   :  { %1487 = vtanh.f32 %v177_v0  ;;  %v1419_v0 = vld [vmem:[#allocation6 + $0x47] ss:$0 sm:$0xff] }
  0x9e   :  { %v121_v4 = vpop.xlane.xlu0 %120  ;;  %1489 = vtanh.f32 %v109_v42  ;;  %v615_v19 = vmul.f32 %v1419_v0, %v1870_v2  ;;  %v1425_v0 = vld [vmem:[#allocation6 + $0x28] ss:$0 sm:$0xff] }
  0x9f   :  { %1491 = vtanh.f32 %v112_v54 }
  0xa0   :  { %1493 = vtanh.f32 %v106_v55 }
  0xa1   :  { %561 = vadd.xlane.f32.xlu2 %v560_v6  ;;  %558 = vadd.xlane.f32.xlu1 %v557_v8  ;;  %v617_v6 = vmul.f32 %v1418_v57, %v1896_v31  ;;  %v616_v8 = vmul.f32 %v1417_v60, %v1877_v10  ;;  %v1423_v60 = vld [vmem:[#allocation6 + $0x38] ss:$0 sm:$0xff] }
  0xa3   :  { %v1488_v20 = vpop.eup %1487  ;;  %555 = vadd.xlane.f32.xlu0 %v554_v12 }
  0xa4   :  { %v209_v23 = vmul.f32 %v1488_v20, %v2002_v18  ;;  %v186_v24 = vpop.xlane.xlu2 %185  ;;  %v183_v26 = vpop.xlane.xlu1 %182 }
  0xa5   :  { %1495 = vtanh.f32 %v186_v24  ;;  %v1490_v35 = vpop.eup %1489 }
  0xa6   :  { %v2009_v29 = vadd.f32 %v209_v23, %v135_v22  ;;  %1497 = vtanh.f32 %v183_v26  ;;  %v180_v30 = vpop.xlane.xlu0 %179  ;;  %v1492_v38 = vpop.eup %1491  ;;  %v137_v50 = vmul.f32 %v1490_v35, %v2000_v16 }
  0xa7   :  { %1499 = vtanh.f32 %v180_v30  ;;  %v1494_v41 = vpop.eup %1493  ;;  %v138_v45 = vmul.f32 %v1492_v38, %v2000_v16  ;;  %v637_v30 = vsel %vm100_vm0, %v617_v6, 0.0  ;;  %v2052_v38 = vstv %s2032_s29 }
  0xa8   :  { %1501 = vtanh.f32 %v1978_v40  ;;  %v136_v54 = vmul.f32 %v1494_v41, %v2000_v16  ;;  %v687_v6 = vmul.f32 %v1425_v0, %v1872_v5 }
  0xa9   :  { %620 = vadd.xlane.f32.xlu2 %v619_v32  ;;  %567 = vadd.xlane.f32.xlu1 %v566_v33  ;;  %1503 = vtanh.f32 %v121_v4  ;;  %v634_v33 = vsel %vm100_vm0, %v616_v8, 0.0 }
  0xaa   :  { %1505 = vtanh.f32 %v1986_v52  ;;  %v699_v25 = vsel %vm100_vm0, %v687_v6, 0.0  ;;  %v1432_v6 = vld [vmem:[#allocation6 + $0x49] ss:$0 sm:$0xff] }
  0xab   :  { %v1496_v42 = vpop.eup %1495  ;;  %564 = vadd.xlane.f32.xlu0 %v563_v36  ;;  %v631_v36 = vsel %vm100_vm0, %v615_v19, 0.0 }
  0xac   :  { %v1498_v44 = vpop.eup %1497  ;;  %v212_v46 = vmul.f32 %v1496_v42, %v2002_v18  ;;  %v195_v47 = vpop.xlane.xlu2 %194 }
  0xad   :  { %v1500_v49 = vpop.eup %1499  ;;  %v211_v40 = vmul.f32 %v1498_v44, %v2002_v18  ;;  %v192_v51 = vpop.xlane.xlu1 %191  ;;  %1507 = vtanh.f32 %v195_v47  ;;  %v618_v47 = vmul.f32 %v1422_v37, %v1892_v27 }
  0xae   :  { %v2025_v55 = vadd.f32 %v212_v46, %v138_v45  ;;  %v210_v52 = vmul.f32 %v1500_v49, %v2002_v18  ;;  %1509 = vtanh.f32 %v192_v51  ;;  %v189_v56 = vpop.xlane.xlu0 %188  ;;  %v1502_v61 = vpop.eup %1501 }
  0xaf   :  { %v2028_v58 = vadd.f32 %v211_v40, %v137_v50  ;;  %1511 = vtanh.f32 %v189_v56  ;;  %v1504_v1 = vpop.eup %1503  ;;  %v139_v21 = vmul.f32 %v1502_v61, %v2000_v16  ;;  %v696_v40 = vsel %vm100_vm0, %v686_v39, 0.0  ;;  %v1424_v56 = vld [vmem:[#allocation6 + $0x48] ss:$0 sm:$0xff] }
  0xb0   :  { %v218_v62 = vadd.f32 %v210_v52, %v136_v54  ;;  %v1506_v4 = vpop.eup %1505  ;;  %1513 = vtanh.f32 %v1995_v3  ;;  %v141_v12 = vmul.f32 %v1504_v1, %v2000_v16 }
  0xb1   :  { %629 = vadd.xlane.f32.xlu2 %v628_v53  ;;  %626 = vadd.xlane.f32.xlu1 %v625_v59  ;;  %v140_v22 = vmul.f32 %v1506_v4, %v2000_v16  ;;  %v693_v59 = vsel %vm100_vm0, %v685_v43, 0.0 }
  0xb3   :  { %v1508_v7 = vpop.eup %1507  ;;  %623 = vadd.xlane.f32.xlu0 %v622_v63  ;;  %v640_v63 = vsel %vm100_vm0, %v618_v47, 0.0 }
  0xb4   :  { %v1510_v11 = vpop.eup %1509  ;;  %v215_v14 = vmul.f32 %v1508_v7, %v2002_v18  ;;  %v254_v15 = vpop.xlane.xlu2 %253 }
  0xb5   :  { %v1512_v20 = vpop.eup %1511  ;;  %v214_v23 = vmul.f32 %v1510_v11, %v2002_v18  ;;  %v251_v24 = vpop.xlane.xlu1 %250  ;;  %1515 = vtanh.f32 %v254_v15 }
  0xb6   :  { %v2043_v26 = vadd.f32 %v215_v14, %v141_v12  ;;  %v213_v3 = vmul.f32 %v1512_v20, %v2002_v18  ;;  %1517 = vtanh.f32 %v251_v24  ;;  %v198_v28 = vpop.xlane.xlu0 %197  ;;  %v1514_v41 = vpop.eup %1513  ;;  %v1427_v20 = vld [vmem:[#allocation6 + $0x78] ss:$0 sm:$0xff] }
  0xb7   :  { %v2047_v32 = vadd.f32 %v214_v23, %v140_v22  ;;  %1519 = vtanh.f32 %v198_v28  ;;  %v142_v51 = vmul.f32 %v1514_v41, %v2000_v16  ;;  %v689_v16 = vmul.f32 %v1424_v56, %v1870_v2  ;;  %v1426_v23 = vld [vmem:[#allocation6 + $0x68] ss:$0 sm:$0xff] }
  0xb8   :  { %v221_v35 = vadd.f32 %v213_v3, %v139_v21  ;;  %v1428_v3 = vld [vmem:[#allocation6 + $0x58] ss:$0 sm:$0xff]  ;;  %v692_v28 = vmul.f32 %v1427_v20, %v1892_v27 }
  0xb9   :  { %638 = vadd.xlane.f32.xlu2 %v637_v30  ;;  %635 = vadd.xlane.f32.xlu1 %v634_v33  ;;  %v705_v19 = vsel %vm100_vm0, %v689_v16, 0.0  ;;  %v691_v33 = vmul.f32 %v1426_v23, %v1896_v31 }
  0xbb   :  { %v1516_v42 = vpop.eup %1515  ;;  %632 = vadd.xlane.f32.xlu0 %v631_v36  ;;  %v690_v36 = vmul.f32 %v1428_v3, %v1877_v10  ;;  %v711_v47 = vsel %vm100_vm0, %v691_v33, 0.0 }
  0xbc   :  { %v1518_v44 = vpop.eup %1517  ;;  %v284_v45 = vmul.f32 %v1516_v42, %v2052_v38  ;;  %v263_v46 = vpop.xlane.xlu2 %262 }
  0xbd   :  { %v1520_v48 = vpop.eup %1519  ;;  %v283_v49 = vmul.f32 %v1518_v44, %v2052_v38  ;;  %v260_v50 = vpop.xlane.xlu1 %259  ;;  %1521 = vtanh.f32 %v263_v46  ;;  %v714_v44 = vsel %vm100_vm0, %v692_v28, 0.0 }
  0xbe   :  { %v2061_v53 = vadd.f32 %v284_v45, %v218_v62  ;;  %v216_v54 = vmul.f32 %v1520_v48, %v2002_v18  ;;  %1523 = vtanh.f32 %v260_v50  ;;  %v257_v52 = vpop.xlane.xlu0 %256  ;;  %v688_v18 = vmul.f32 %v1423_v60, %v1880_v13  ;;  %v1430_v45 = vld [vmem:[#allocation6 + $0x29] ss:$0 sm:$0xff]  ;;  %v1429_v48 = vld [vmem:[#allocation6 + $0x19] ss:$0 sm:$0xff] }
  0xbf   :  { %v2065_v57 = vadd.f32 %v283_v49, %v2009_v29  ;;  %1525 = vtanh.f32 %v257_v52  ;;  %v708_v50 = vsel %vm100_vm0, %v690_v36, 0.0  ;;  %v1435_v36 = vld [vmem:[#allocation6 + $0x79] ss:$0 sm:$0xff] }
  0xc0   :  { %v224_v61 = vadd.f32 %v216_v54, %v142_v51  ;;  %v702_v22 = vsel %vm100_vm0, %v688_v18, 0.0  ;;  %v2099_v51 = vstv %s1317_s30 }
  0xc1   :  { %697 = vadd.xlane.f32.xlu2 %v696_v40  ;;  %694 = vadd.xlane.f32.xlu1 %v693_v59  ;;  %v1431_v40 = vld [vmem:[#allocation6 + $0x9] ss:$0 sm:$0xff] }
  0xc2   :  { %v759_v60 = vmul.f32 %v1431_v40, %v1875_v9 }
  0xc3   :  { %v1522_v62 = vpop.eup %1521  ;;  %641 = vadd.xlane.f32.xlu0 %v640_v63 }
  0xc4   :  { %v1524_v1 = vpop.eup %1523  ;;  %v287_v29 = vmul.f32 %v1522_v62, %v2052_v38  ;;  %v272_v4 = vpop.xlane.xlu2 %271 }
  0xc5   :  { %v1526_v7 = vpop.eup %1525  ;;  %v286_v8 = vmul.f32 %v1524_v1, %v2052_v38  ;;  %v269_v11 = vpop.xlane.xlu1 %268  ;;  %1527 = vtanh.f32 %v272_v4  ;;  %v1433_v1 = vld [vmem:[#allocation6 + $0x59] ss:$0 sm:$0xff] }
  0xc6   :  { %v2074_v12 = vadd.f32 %v287_v29, %v221_v35  ;;  %v285_v14 = vmul.f32 %v1526_v7, %v2052_v38  ;;  %1529 = vtanh.f32 %v269_v11  ;;  %v266_v15 = vpop.xlane.xlu0 %265  ;;  %v1434_v11 = vld [vmem:[#allocation6 + $0x39] ss:$0 sm:$0xff] }
  0xc7   :  { %v2079_v21 = vadd.f32 %v286_v8, %v2025_v55  ;;  %1531 = vtanh.f32 %v266_v15  ;;  %v767_v8 = vsel %vm100_vm0, %v759_v60, 0.0  ;;  %v762_v23 = vmul.f32 %v1434_v11, %v1880_v13 }
  0xc8   :  { %v293_v24 = vadd.f32 %v285_v14, %v2028_v58  ;;  %v764_v14 = vmul.f32 %v1433_v1, %v1877_v10 }
  0xc9   :  { %706 = vadd.xlane.f32.xlu2 %v705_v19  ;;  %703 = vadd.xlane.f32.xlu1 %v702_v22  ;;  %v763_v19 = vmul.f32 %v1432_v6, %v1870_v2 }
  0xca   :  { %v782_v33 = vsel %vm100_vm0, %v764_v14, 0.0 }
  0xcb   :  { %v1528_v30 = vpop.eup %1527  ;;  %700 = vadd.xlane.f32.xlu0 %v699_v25 }
  0xcc   :  { %v1530_v55 = vpop.eup %1529  ;;  %v290_v34 = vmul.f32 %v1528_v30, %v2052_v38  ;;  %v331_v35 = vpop.xlane.xlu2 %330 }
  0xcd   :  { %v1532_v37 = vpop.eup %1531  ;;  %v289_v58 = vmul.f32 %v1530_v55, %v2052_v38  ;;  %v328_v39 = vpop.xlane.xlu1 %327  ;;  %1533 = vtanh.f32 %v331_v35  ;;  %v1436_v55 = vld [vmem:[#allocation6 + $0xa] ss:$0 sm:$0xff]  ;;  %v779_v35 = vsel %vm100_vm0, %v763_v19, 0.0 }
  0xce   :  { %v2089_v41 = vadd.f32 %v290_v34, %v224_v61  ;;  %v288_v42 = vmul.f32 %v1532_v37, %v2052_v38  ;;  %1535 = vtanh.f32 %v328_v39  ;;  %v325_v43 = vpop.xlane.xlu0 %324  ;;  %v761_v38 = vmul.f32 %v1430_v45, %v1872_v5  ;;  %v1437_v39 = vld [vmem:[#allocation6 + $0x69] ss:$0 sm:$0xff] }
  0xcf   :  { %v2094_v46 = vadd.f32 %v289_v58, %v2043_v26  ;;  %1537 = vtanh.f32 %v325_v43  ;;  %v760_v26 = vmul.f32 %v1429_v48, %v1884_v17  ;;  %v776_v58 = vsel %vm100_vm0, %v762_v23, 0.0  ;;  %v1441_v23 = vld [vmem:[#allocation6 + $0x5a] ss:$0 sm:$0xff] }
  0xd0   :  { %v296_v49 = vadd.f32 %v288_v42, %v2047_v32  ;;  %v773_v18 = vsel %vm100_vm0, %v761_v38, 0.0  ;;  %v2131_v42 = vstv %s1318_s4  ;;  %v833_v43 = vmul.f32 %v1436_v55, %v1875_v9 }
  0xd1   :  { %715 = vadd.xlane.f32.xlu2 %v714_v44  ;;  %712 = vadd.xlane.f32.xlu1 %v711_v47  ;;  %v770_v4 = vsel %vm100_vm0, %v760_v26, 0.0 }
  0xd3   :  { %v1534_v54 = vpop.eup %1533  ;;  %709 = vadd.xlane.f32.xlu0 %v708_v50 }
  0xd4   :  { %v1536_v52 = vpop.eup %1535  ;;  %v359_v56 = vmul.f32 %v1534_v54, %v2099_v51  ;;  %v340_v59 = vpop.xlane.xlu2 %339 }
  0xd5   :  { %v1538_v32 = vpop.eup %1537  ;;  %v358_v61 = vmul.f32 %v1536_v52, %v2099_v51  ;;  %v337_v63 = vpop.xlane.xlu1 %336  ;;  %1539 = vtanh.f32 %v340_v59  ;;  %v841_v52 = vsel %vm100_vm0, %v833_v43, 0.0 }
  0xd6   :  { %v2106_v0 = vadd.f32 %v359_v56, %v293_v24  ;;  %v357_v16 = vmul.f32 %v1538_v32, %v2099_v51  ;;  %1541 = vtanh.f32 %v337_v63  ;;  %v334_v62 = vpop.xlane.xlu0 %333  ;;  %v1439_v56 = vld [vmem:[#allocation6 + $0x3a] ss:$0 sm:$0xff]  ;;  %v1438_v32 = vld [vmem:[#allocation6 + $0x2a] ss:$0 sm:$0xff] }
  0xd7   :  { %v2111_v29 = vadd.f32 %v358_v61, %v2061_v53  ;;  %1543 = vtanh.f32 %v334_v62 }
  0xd8   :  { %v365_v7 = vadd.f32 %v357_v16, %v2065_v57  ;;  %v1440_v16 = vld [vmem:[#allocation6 + $0x1a] ss:$0 sm:$0xff] }
  0xd9   :  { %774 = vadd.xlane.f32.xlu2 %v773_v18  ;;  %771 = vadd.xlane.f32.xlu1 %v770_v4  ;;  %v835_v18 = vmul.f32 %v1438_v32, %v1872_v5  ;;  %v834_v6 = vmul.f32 %v1440_v16, %v1884_v17 }
  0xdb   :  { %v1540_v15 = vpop.eup %1539  ;;  %768 = vadd.xlane.f32.xlu0 %v767_v8 }
  0xdc   :  { %v1542_v53 = vpop.eup %1541  ;;  %v362_v20 = vmul.f32 %v1540_v15, %v2099_v51  ;;  %v399_v22 = vpop.xlane.xlu2 %398 }
  0xdd   :  { %v1544_v24 = vpop.eup %1543  ;;  %v361_v57 = vmul.f32 %v1542_v53, %v2099_v51  ;;  %v346_v25 = vpop.xlane.xlu1 %345  ;;  %1545 = vtanh.f32 %v399_v22  ;;  %v1442_v53 = vld [vmem:[#allocation6 + $0x6a] ss:$0 sm:$0xff]  ;;  %v847_v22 = vsel %vm100_vm0, %v835_v18, 0.0 }
  0xde   :  { %v2121_v3 = vadd.f32 %v362_v20, %v296_v49  ;;  %v360_v28 = vmul.f32 %v1544_v24, %v2099_v51  ;;  %1547 = vtanh.f32 %v346_v25  ;;  %v343_v30 = vpop.xlane.xlu0 %342  ;;  %v765_v49 = vmul.f32 %v1437_v39, %v1896_v31  ;;  %v1443_v25 = vld [vmem:[#allocation6 + $0x4a] ss:$0 sm:$0xff] }
  0xdf   :  { %v2126_v34 = vadd.f32 %v361_v57, %v2074_v12  ;;  %1549 = vtanh.f32 %v343_v30  ;;  %v766_v12 = vmul.f32 %v1435_v36, %v1892_v27  ;;  %v844_v57 = vsel %vm100_vm0, %v834_v6, 0.0 }
  0xe0   :  { %v368_v37 = vadd.f32 %v360_v28, %v2079_v21  ;;  %v785_v63 = vsel %vm100_vm0, %v765_v49, 0.0  ;;  %v839_v28 = vmul.f32 %v1442_v53, %v1896_v31  ;;  %v837_v36 = vmul.f32 %v1443_v25, %v1870_v2  ;;  %v1444_v49 = vld [vmem:[#allocation6 + $0xb] ss:$0 sm:$0xff] }
  0xe1   :  { %783 = vadd.xlane.f32.xlu2 %v782_v33  ;;  %780 = vadd.xlane.f32.xlu1 %v779_v35  ;;  %v788_v60 = vsel %vm100_vm0, %v766_v12, 0.0  ;;  %v838_v33 = vmul.f32 %v1441_v23, %v1877_v10 }
  0xe2   :  { %v859_v12 = vsel %vm100_vm0, %v839_v28, 0.0 }
  0xe3   :  { %v1546_v44 = vpop.eup %1545  ;;  %777 = vadd.xlane.f32.xlu0 %v776_v58 }
  0xe4   :  { %v1548_v45 = vpop.eup %1547  ;;  %v431_v47 = vmul.f32 %v1546_v44, %v2131_v42  ;;  %v408_v48 = vpop.xlane.xlu2 %407 }
  0xe5   :  { %v1550_v21 = vpop.eup %1549  ;;  %v364_v50 = vmul.f32 %v1548_v45, %v2099_v51  ;;  %v405_v40 = vpop.xlane.xlu1 %404  ;;  %1551 = vtanh.f32 %v408_v48  ;;  %v1445_v45 = vld [vmem:[#allocation6 + $0x1b] ss:$0 sm:$0xff]  ;;  %v856_v48 = vsel %vm100_vm0, %v838_v33, 0.0 }
  0xe6   :  { %v2138_v38 = vadd.f32 %v431_v47, %v365_v7  ;;  %v363_v54 = vmul.f32 %v1550_v21, %v2099_v51  ;;  %1553 = vtanh.f32 %v405_v40  ;;  %v402_v26 = vpop.xlane.xlu0 %401  ;;  %v836_v51 = vmul.f32 %v1439_v56, %v1880_v13  ;;  %v1446_v40 = vld [vmem:[#allocation6 + $0x7a] ss:$0 sm:$0xff] }
  0xe7   :  { %v2143_v59 = vadd.f32 %v364_v50, %v2089_v41  ;;  %1555 = vtanh.f32 %v402_v26  ;;  %v853_v50 = vsel %vm100_vm0, %v837_v36, 0.0  ;;  %v908_v26 = vmul.f32 %v1445_v45, %v1884_v17  ;;  %v1450_v36 = vld [vmem:[#allocation6 + $0x6b] ss:$0 sm:$0xff] }
  0xe8   :  { %v371_v61 = vadd.f32 %v363_v54, %v2094_v46  ;;  %v850_v19 = vsel %vm100_vm0, %v836_v51, 0.0  ;;  %v2178_v54 = vstv %s1319_s5 }
  0xe9   :  { %842 = vadd.xlane.f32.xlu2 %v841_v52  ;;  %789 = vadd.xlane.f32.xlu1 %v788_v60 }
  0xeb   :  { %v1552_v62 = vpop.eup %1551  ;;  %786 = vadd.xlane.f32.xlu0 %v785_v63 }
  0xec   :  { %v1554_v1 = vpop.eup %1553  ;;  %v434_v41 = vmul.f32 %v1552_v62, %v2131_v42  ;;  %v417_v4 = vpop.xlane.xlu2 %416 }
  0xed   :  { %v1556_v7 = vpop.eup %1555  ;;  %v433_v46 = vmul.f32 %v1554_v1, %v2131_v42  ;;  %v414_v8 = vpop.xlane.xlu1 %413  ;;  %1557 = vtanh.f32 %v417_v4  ;;  %v918_v1 = vsel %vm100_vm0, %v908_v26, 0.0 }
  0xee   :  { %v2153_v11 = vadd.f32 %v434_v41, %v368_v37  ;;  %v432_v14 = vmul.f32 %v1556_v7, %v2131_v42  ;;  %1559 = vtanh.f32 %v414_v8  ;;  %v411_v15 = vpop.xlane.xlu0 %410  ;;  %v1448_v41 = vld [vmem:[#allocation6 + $0x4b] ss:$0 sm:$0xff]  ;;  %v1447_v7 = vld [vmem:[#allocation6 + $0x3b] ss:$0 sm:$0xff] }
  0xef   :  { %v2158_v20 = vadd.f32 %v433_v46, %v2106_v0  ;;  %1561 = vtanh.f32 %v411_v15 }
  0xf0   :  { %v440_v24 = vadd.f32 %v432_v14, %v2111_v29  ;;  %v1449_v14 = vld [vmem:[#allocation6 + $0x2b] ss:$0 sm:$0xff] }
  0xf1   :  { %851 = vadd.xlane.f32.xlu2 %v850_v19  ;;  %848 = vadd.xlane.f32.xlu1 %v847_v22  ;;  %v910_v19 = vmul.f32 %v1447_v7, %v1880_v13  ;;  %v909_v23 = vmul.f32 %v1449_v14, %v1872_v5 }
  0xf3   :  { %v1558_v30 = vpop.eup %1557  ;;  %845 = vadd.xlane.f32.xlu0 %v844_v57 }
  0xf4   :  { %v1560_v0 = vpop.eup %1559  ;;  %v437_v55 = vmul.f32 %v1558_v30, %v2131_v42  ;;  %v476_v35 = vpop.xlane.xlu2 %475 }
  0xf5   :  { %v1562_v37 = vpop.eup %1561  ;;  %v436_v29 = vmul.f32 %v1560_v0, %v2131_v42  ;;  %v473_v58 = vpop.xlane.xlu1 %472  ;;  %1563 = vtanh.f32 %v476_v35  ;;  %v1451_v0 = vld [vmem:[#allocation6 + $0x7b] ss:$0 sm:$0xff]  ;;  %v924_v35 = vsel %vm100_vm0, %v910_v19, 0.0 }
  0xf6   :  { %v2168_v39 = vadd.f32 %v437_v55, %v371_v61  ;;  %v435_v43 = vmul.f32 %v1562_v37, %v2131_v42  ;;  %1565 = vtanh.f32 %v473_v58  ;;  %v420_v44 = vpop.xlane.xlu0 %419  ;;  %v840_v61 = vmul.f32 %v1446_v40, %v1892_v27  ;;  %v1452_v58 = vld [vmem:[#allocation6 + $0x5b] ss:$0 sm:$0xff] }
  0xf7   :  { %v2173_v47 = vadd.f32 %v436_v29, %v2121_v3  ;;  %1567 = vtanh.f32 %v420_v44  ;;  %v907_v3 = vmul.f32 %v1444_v49, %v1875_v9  ;;  %v921_v29 = vsel %vm100_vm0, %v909_v23, 0.0  ;;  %v1456_v23 = vld [vmem:[#allocation6 + $0x4c] ss:$0 sm:$0xff] }
  0xf8   :  { %v443_v21 = vadd.f32 %v435_v43, %v2126_v34  ;;  %v862_v8 = vsel %vm100_vm0, %v840_v61, 0.0  ;;  %v914_v43 = vmul.f32 %v1451_v0, %v1892_v27  ;;  %v912_v49 = vmul.f32 %v1452_v58, %v1877_v10  ;;  %v1453_v61 = vld [vmem:[#allocation6 + $0x1c] ss:$0 sm:$0xff] }
  0xf9   :  { %860 = vadd.xlane.f32.xlu2 %v859_v12  ;;  %857 = vadd.xlane.f32.xlu1 %v856_v48  ;;  %v915_v6 = vsel %vm100_vm0, %v907_v3, 0.0  ;;  %v913_v12 = vmul.f32 %v1450_v36, %v1896_v31 }
  0xfa   :  { %v936_v3 = vsel %vm100_vm0, %v914_v43, 0.0 }
  0xfb   :  { %v1564_v52 = vpop.eup %1563  ;;  %854 = vadd.xlane.f32.xlu0 %v853_v50 }
  0xfc   :  { %v1566_v56 = vpop.eup %1565  ;;  %v506_v60 = vmul.f32 %v1564_v52, %v2178_v54  ;;  %v485_v32 = vpop.xlane.xlu2 %484 }
  0xfd   :  { %v1568_v34 = vpop.eup %1567  ;;  %v505_v63 = vmul.f32 %v1566_v56, %v2178_v54  ;;  %v482_v16 = vpop.xlane.xlu1 %481  ;;  %1569 = vtanh.f32 %v485_v32  ;;  %v1454_v56 = vld [vmem:[#allocation6 + $0x2c] ss:$0 sm:$0xff]  ;;  %v933_v32 = vsel %vm100_vm0, %v913_v12, 0.0 }
  0xfe   :  { %v2185_v51 = vadd.f32 %v506_v60, %v440_v24  ;;  %v438_v62 = vmul.f32 %v1568_v34, %v2131_v42  ;;  %1571 = vtanh.f32 %v482_v16  ;;  %v479_v18 = vpop.xlane.xlu0 %478  ;;  %v911_v42 = vmul.f32 %v1448_v41, %v1870_v2  ;;  %v1455_v16 = vld [vmem:[#allocation6 + $0xc] ss:$0 sm:$0xff] }
  0xff   :  { %v2190_v4 = vadd.f32 %v505_v63, %v2138_v38  ;;  %1573 = vtanh.f32 %v479_v18  ;;  %v930_v63 = vsel %vm100_vm0, %v912_v49, 0.0  ;;  %v981_v7 = vmul.f32 %v1455_v16, %v1875_v9  ;;  %v1459_v49 = vld [vmem:[#allocation6 + $0x7c] ss:$0 sm:$0xff] }
 0x100   :  { %v446_v46 = vadd.f32 %v438_v62, %v2143_v59  ;;  %v927_v33 = vsel %vm100_vm0, %v911_v42, 0.0  ;;  %v2225_v62 = vstv %s1320_s6 }
 0x101   :  { %919 = vadd.xlane.f32.xlu2 %v918_v1  ;;  %916 = vadd.xlane.f32.xlu1 %v915_v6 }
 0x103   :  { %v1570_v15 = vpop.eup %1569  ;;  %863 = vadd.xlane.f32.xlu0 %v862_v8 }
 0x104   :  { %v1572_v53 = vpop.eup %1571  ;;  %v509_v38 = vmul.f32 %v1570_v15, %v2178_v54  ;;  %v494_v22 = vpop.xlane.xlu2 %493 }
 0x105   :  { %v1574_v24 = vpop.eup %1573  ;;  %v508_v59 = vmul.f32 %v1572_v53, %v2178_v54  ;;  %v491_v57 = vpop.xlane.xlu1 %490  ;;  %1575 = vtanh.f32 %v494_v22  ;;  %v1457_v53 = vld [vmem:[#allocation6 + $0x5c] ss:$0 sm:$0xff] }
 0x106   :  { %v2200_v25 = vadd.f32 %v509_v38, %v443_v21  ;;  %v507_v28 = vmul.f32 %v1574_v24, %v2178_v54  ;;  %1577 = vtanh.f32 %v491_v57  ;;  %v488_v30 = vpop.xlane.xlu0 %487  ;;  %v1458_v57 = vld [vmem:[#allocation6 + $0x3c] ss:$0 sm:$0xff] }
 0x107   :  { %v2205_v55 = vadd.f32 %v508_v59, %v2153_v11  ;;  %1579 = vtanh.f32 %v488_v30  ;;  %v989_v59 = vsel %vm100_vm0, %v981_v7, 0.0  ;;  %v984_v36 = vmul.f32 %v1458_v57, %v1880_v13 }
 0x108   :  { %v515_v37 = vadd.f32 %v507_v28, %v2158_v20  ;;  %v986_v28 = vmul.f32 %v1457_v53, %v1877_v10 }
 0x109   :  { %928 = vadd.xlane.f32.xlu2 %v927_v33  ;;  %925 = vadd.xlane.f32.xlu1 %v924_v35  ;;  %v985_v33 = vmul.f32 %v1456_v23, %v1870_v2 }
 0x10a   :  { %v1004_v12 = vsel %vm100_vm0, %v986_v28, 0.0 }
 0x10b   :  { %v1576_v44 = vpop.eup %1575  ;;  %922 = vadd.xlane.f32.xlu0 %v921_v29 }
 0x10c   :  { %v1578_v11 = vpop.eup %1577  ;;  %v512_v45 = vmul.f32 %v1576_v44, %v2178_v54  ;;  %v553_v48 = vpop.xlane.xlu2 %552 }
 0x10d   :  { %v1580_v21 = vpop.eup %1579  ;;  %v511_v20 = vmul.f32 %v1578_v11, %v2178_v54  ;;  %v550_v50 = vpop.xlane.xlu1 %549  ;;  %1581 = vtanh.f32 %v553_v48  ;;  %v1460_v11 = vld [vmem:[#allocation6 + $0xd] ss:$0 sm:$0xff]  ;;  %v1001_v48 = vsel %vm100_vm0, %v985_v33, 0.0 }
 0x10e   :  { %v2215_v40 = vadd.f32 %v512_v45, %v446_v46  ;;  %v510_v26 = vmul.f32 %v1580_v21, %v2178_v54  ;;  %1583 = vtanh.f32 %v550_v50  ;;  %v547_v52 = vpop.xlane.xlu0 %546  ;;  %v983_v54 = vmul.f32 %v1454_v56, %v1872_v5  ;;  %v1461_v50 = vld [vmem:[#allocation6 + $0x6c] ss:$0 sm:$0xff] }
 0x10f   :  { %v2220_v60 = vadd.f32 %v511_v20, %v2168_v39  ;;  %1585 = vtanh.f32 %v547_v52  ;;  %v982_v39 = vmul.f32 %v1453_v61, %v1884_v17  ;;  %v998_v20 = vsel %vm100_vm0, %v984_v36, 0.0  ;;  %v1465_v36 = vld [vmem:[#allocation6 + $0x1e] ss:$0 sm:$0xff] }
 0x110   :  { %v518_v34 = vadd.f32 %v510_v26, %v2173_v47  ;;  %v995_v19 = vsel %vm100_vm0, %v983_v54, 0.0  ;;  %v2257_v26 = vstv %s1321_s7  ;;  %v1055_v52 = vmul.f32 %v1460_v11, %v1875_v9 }
 0x111   :  { %937 = vadd.xlane.f32.xlu2 %v936_v3  ;;  %934 = vadd.xlane.f32.xlu1 %v933_v32  ;;  %v992_v22 = vsel %vm100_vm0, %v982_v39, 0.0 }
 0x113   :  { %v1582_v18 = vpop.eup %1581  ;;  %931 = vadd.xlane.f32.xlu0 %v930_v63 }
 0x114   :  { %v1584_v1 = vpop.eup %1583  ;;  %v581_v41 = vmul.f32 %v1582_v18, %v2225_v62  ;;  %v562_v6 = vpop.xlane.xlu2 %561 }
 0x115   :  { %v1586_v47 = vpop.eup %1585  ;;  %v580_v46 = vmul.f32 %v1584_v1, %v2225_v62  ;;  %v559_v8 = vpop.xlane.xlu1 %558  ;;  %1587 = vtanh.f32 %v562_v6  ;;  %v1063_v1 = vsel %vm100_vm0, %v1055_v52, 0.0 }
 0x116   :  { %v2232_v14 = vadd.f32 %v581_v41, %v515_v37  ;;  %v579_v42 = vmul.f32 %v1586_v47, %v2225_v62  ;;  %1589 = vtanh.f32 %v559_v8  ;;  %v556_v15 = vpop.xlane.xlu0 %555  ;;  %v1463_v41 = vld [vmem:[#allocation6 + $0x3d] ss:$0 sm:$0xff]  ;;  %v1462_v47 = vld [vmem:[#allocation6 + $0x2d] ss:$0 sm:$0xff] }
 0x117   :  { %v2237_v38 = vadd.f32 %v580_v46, %v2185_v51  ;;  %1591 = vtanh.f32 %v556_v15 }
 0x118   :  { %v587_v24 = vadd.f32 %v579_v42, %v2190_v4  ;;  %v1464_v42 = vld [vmem:[#allocation6 + $0x1d] ss:$0 sm:$0xff] }
 0x119   :  { %996 = vadd.xlane.f32.xlu2 %v995_v19  ;;  %993 = vadd.xlane.f32.xlu1 %v992_v22  ;;  %v1057_v19 = vmul.f32 %v1462_v47, %v1872_v5  ;;  %v1056_v23 = vmul.f32 %v1464_v42, %v1884_v17 }
 0x11b   :  { %v1588_v30 = vpop.eup %1587  ;;  %990 = vadd.xlane.f32.xlu0 %v989_v59 }
 0x11c   :  { %v1590_v51 = vpop.eup %1589  ;;  %v584_v0 = vmul.f32 %v1588_v30, %v2225_v62  ;;  %v621_v35 = vpop.xlane.xlu2 %620 }
 0x11d   :  { %v1592_v37 = vpop.eup %1591  ;;  %v583_v4 = vmul.f32 %v1590_v51, %v2225_v62  ;;  %v568_v29 = vpop.xlane.xlu1 %567  ;;  %1593 = vtanh.f32 %v621_v35  ;;  %v1466_v51 = vld [vmem:[#allocation6 + $0x4d] ss:$0 sm:$0xff]  ;;  %v1069_v35 = vsel %vm100_vm0, %v1057_v19, 0.0 }
 0x11e   :  { %v2247_v58 = vadd.f32 %v584_v0, %v518_v34  ;;  %v582_v43 = vmul.f32 %v1592_v37, %v2225_v62  ;;  %1595 = vtanh.f32 %v568_v29  ;;  %v565_v44 = vpop.xlane.xlu0 %564  ;;  %v987_v34 = vmul.f32 %v1461_v50, %v1896_v31  ;;  %v1467_v29 = vld [vmem:[#allocation6 + $0xe] ss:$0 sm:$0xff] }
 0x11f   :  { %v2252_v45 = vadd.f32 %v583_v4, %v2200_v25  ;;  %1597 = vtanh.f32 %v565_v44  ;;  %v988_v25 = vmul.f32 %v1459_v49, %v1892_v27  ;;  %v1066_v4 = vsel %vm100_vm0, %v1056_v23, 0.0 }
 0x120   :  { %v590_v21 = vadd.f32 %v582_v43, %v2205_v55  ;;  %v1007_v8 = vsel %vm100_vm0, %v987_v34, 0.0  ;;  %v1059_v43 = vmul.f32 %v1466_v51, %v1870_v2  ;;  %v1129_v49 = vmul.f32 %v1467_v29, %v1875_v9  ;;  %v1468_v34 = vld [vmem:[#allocation6 + $0x5d] ss:$0 sm:$0xff] }
 0x121   :  { %1005 = vadd.xlane.f32.xlu2 %v1004_v12  ;;  %1002 = vadd.xlane.f32.xlu1 %v1001_v48  ;;  %v1010_v7 = vsel %vm100_vm0, %v988_v25, 0.0  ;;  %v1130_v12 = vmul.f32 %v1465_v36, %v1884_v17 }
 0x122   :  { %v1075_v25 = vsel %vm100_vm0, %v1059_v43, 0.0 }
 0x123   :  { %v1594_v3 = vpop.eup %1593  ;;  %999 = vadd.xlane.f32.xlu0 %v998_v20 }
 0x124   :  { %v1596_v56 = vpop.eup %1595  ;;  %v653_v32 = vmul.f32 %v1594_v3, %v2257_v26  ;;  %v630_v61 = vpop.xlane.xlu2 %629 }
 0x125   :  { %v1598_v55 = vpop.eup %1597  ;;  %v586_v63 = vmul.f32 %v1596_v56, %v2225_v62  ;;  %v627_v16 = vpop.xlane.xlu1 %626  ;;  %1599 = vtanh.f32 %v630_v61  ;;  %v1469_v56 = vld [vmem:[#allocation6 + $0x3e] ss:$0 sm:$0xff]  ;;  %v1140_v61 = vsel %vm100_vm0, %v1130_v12, 0.0 }
 0x126   :  { %v2264_v54 = vadd.f32 %v653_v32, %v587_v24  ;;  %v585_v18 = vmul.f32 %v1598_v55, %v2225_v62  ;;  %1601 = vtanh.f32 %v627_v16  ;;  %v624_v39 = vpop.xlane.xlu0 %623  ;;  %v1058_v62 = vmul.f32 %v1463_v41, %v1880_v13  ;;  %v1470_v16 = vld [vmem:[#allocation6 + $0x2e] ss:$0 sm:$0xff] }
 0x127   :  { %v2269_v6 = vadd.f32 %v586_v63, %v2215_v40  ;;  %1603 = vtanh.f32 %v624_v39  ;;  %v1137_v63 = vsel %vm100_vm0, %v1129_v49, 0.0  ;;  %v1132_v39 = vmul.f32 %v1469_v56, %v1880_v13 }
 0x128   :  { %v593_v46 = vadd.f32 %v585_v18, %v2220_v60  ;;  %v1072_v33 = vsel %vm100_vm0, %v1058_v62, 0.0  ;;  %v2304_v18 = vstv %s1322_s8 }
 0x129   :  { %1064 = vadd.xlane.f32.xlu2 %v1063_v1  ;;  %1011 = vadd.xlane.f32.xlu1 %v1010_v7 }
 0x12b   :  { %v1600_v15 = vpop.eup %1599  ;;  %1008 = vadd.xlane.f32.xlu0 %v1007_v8 }
 0x12c   :  { %v1602_v53 = vpop.eup %1601  ;;  %v656_v40 = vmul.f32 %v1600_v15, %v2257_v26  ;;  %v639_v22 = vpop.xlane.xlu2 %638 }
 0x12d   :  { %v1604_v24 = vpop.eup %1603  ;;  %v655_v60 = vmul.f32 %v1602_v53, %v2257_v26  ;;  %v636_v59 = vpop.xlane.xlu1 %635  ;;  %1605 = vtanh.f32 %v639_v22  ;;  %v1146_v53 = vsel %vm100_vm0, %v1132_v39, 0.0 }
 0x12e   :  { %v2279_v57 = vadd.f32 %v656_v40, %v590_v21  ;;  %v654_v28 = vmul.f32 %v1604_v24, %v2257_v26  ;;  %1607 = vtanh.f32 %v636_v59  ;;  %v633_v30 = vpop.xlane.xlu0 %632  ;;  %v1472_v40 = vld [vmem:[#allocation6 + $0x6d] ss:$0 sm:$0xff]  ;;  %v1471_v24 = vld [vmem:[#allocation6 + $0x1f] ss:$0 sm:$0xff] }
 0x12f   :  { %v2284_v0 = vadd.f32 %v655_v60, %v2232_v14  ;;  %1609 = vtanh.f32 %v633_v30 }
 0x130   :  { %v662_v37 = vadd.f32 %v654_v28, %v2237_v38  ;;  %v1473_v28 = vld [vmem:[#allocation6 + $0xf] ss:$0 sm:$0xff] }
 0x131   :  { %1073 = vadd.xlane.f32.xlu2 %v1072_v33  ;;  %1070 = vadd.xlane.f32.xlu1 %v1069_v35  ;;  %v1204_v33 = vmul.f32 %v1471_v24, %v1884_v17  ;;  %v1203_v36 = vmul.f32 %v1473_v28, %v1875_v9  ;;  %v1475_v17 = vld [vmem:[#allocation6 + $0x7d] ss:$0 sm:$0xff] }
 0x133   :  { %v1606_v44 = vpop.eup %1605  ;;  %1067 = vadd.xlane.f32.xlu0 %v1066_v4  ;;  %v1214_v9 = vsel %vm100_vm0, %v1204_v33, 0.0  ;;  %v1211_v49 = vsel %vm100_vm0, %v1203_v36, 0.0  ;;  %v1480_v33 = vld [vmem:[#allocation6 + $0x7e] ss:$0 sm:$0xff] }
 0x134   :  { %v1608_v14 = vpop.eup %1607  ;;  %v659_v11 = vmul.f32 %v1606_v44, %v2257_v26  ;;  %v698_v48 = vpop.xlane.xlu2 %697 }
 0x135   :  { %v1610_v21 = vpop.eup %1609  ;;  %v658_v38 = vmul.f32 %v1608_v14, %v2257_v26  ;;  %v695_v20 = vpop.xlane.xlu1 %694  ;;  %1611 = vtanh.f32 %v698_v48 }
 0x136   :  { %v2294_v50 = vadd.f32 %v659_v11, %v593_v46  ;;  %v657_v52 = vmul.f32 %v1610_v21, %v2257_v26  ;;  %1613 = vtanh.f32 %v695_v20  ;;  %v642_v3 = vpop.xlane.xlu0 %641  ;;  %v1131_v46 = vmul.f32 %v1470_v16, %v1872_v5  ;;  %v1474_v11 = vld [vmem:[#allocation6 + $0x2f] ss:$0 sm:$0xff]  ;;  %v1476_v21 = vld [vmem:[#allocation6 + $0x4e] ss:$0 sm:$0xff] }
 0x137   :  { %v2299_v32 = vadd.f32 %v658_v38, %v2247_v58  ;;  %1615 = vtanh.f32 %v642_v3  ;;  %v1060_v58 = vmul.f32 %v1468_v34, %v1877_v10  ;;  %v1062_v38 = vmul.f32 %v1475_v17, %v1892_v27 }
 0x138   :  { %v665_v55 = vadd.f32 %v657_v52, %v2252_v45  ;;  %v1143_v59 = vsel %vm100_vm0, %v1131_v46, 0.0  ;;  %v1205_v52 = vmul.f32 %v1474_v11, %v1872_v5  ;;  %v1133_v56 = vmul.f32 %v1476_v21, %v1870_v2  ;;  %v1478_v5 = vld [vmem:[#allocation6 + $0x6e] ss:$0 sm:$0xff]  ;;  %v1479_v46 = vld [vmem:[#allocation6 + $0x5e] ss:$0 sm:$0xff] }
 0x139   :  { %1076 = vadd.xlane.f32.xlu2 %v1075_v25  ;;  %1141 = vadd.xlane.f32.xlu1 %v1140_v61  ;;  %v1078_v23 = vsel %vm100_vm0, %v1060_v58, 0.0  ;;  %v1084_v39 = vsel %vm100_vm0, %v1062_v38, 0.0  ;;  %v1483_v38 = vld [vmem:[#allocation6 + $0x7f] ss:$0 sm:$0xff] }
 0x13a   :  { %v1217_v58 = vsel %vm100_vm0, %v1205_v52, 0.0  ;;  %v1484_v52 = vld [vmem:[#allocation6 + $0x6f] ss:$0 sm:$0xff] }
 0x13b   :  { %v1612_v1 = vpop.eup %1611  ;;  %1138 = vadd.xlane.f32.xlu0 %v1137_v63 }
 0x13c   :  { %v1614_v41 = vpop.eup %1613  ;;  %v728_v7 = vmul.f32 %v1612_v1, %v2304_v18  ;;  %v707_v47 = vpop.xlane.xlu2 %706 }
 0x13d   :  { %v1616_v45 = vpop.eup %1615  ;;  %v727_v8 = vmul.f32 %v1614_v41, %v2304_v18  ;;  %v704_v42 = vpop.xlane.xlu1 %703  ;;  %1617 = vtanh.f32 %v707_v47  ;;  %v1477_v41 = vld [vmem:[#allocation6 + $0x3f] ss:$0 sm:$0xff]  ;;  %v1149_v47 = vsel %vm100_vm0, %v1133_v56, 0.0 }
 0x13e   :  { %v2311_v62 = vadd.f32 %v728_v7, %v662_v37  ;;  %v660_v15 = vmul.f32 %v1616_v45, %v2257_v26  ;;  %1619 = vtanh.f32 %v704_v42  ;;  %v701_v19 = vpop.xlane.xlu0 %700  ;;  %v1061_v26 = vmul.f32 %v1472_v40, %v1896_v31 }
 0x13f   :  { %v2316_v22 = vadd.f32 %v727_v8, %v2264_v54  ;;  %1621 = vtanh.f32 %v701_v19  ;;  %v2351_v45 = vstv %s1323_s9 }
 0x140   :  { %v668_v60 = vadd.f32 %v660_v15, %v2269_v6  ;;  %v1081_v12 = vsel %vm100_vm0, %v1061_v26, 0.0 }
 0x141   :  { %1147 = vadd.xlane.f32.xlu2 %v1146_v53  ;;  %1079 = vadd.xlane.f32.xlu1 %v1078_v23  ;;  %v1134_v53 = vmul.f32 %v1479_v46, %v1877_v10 }
 0x143   :  { %v1618_v30 = vpop.eup %1617  ;;  %1144 = vadd.xlane.f32.xlu0 %v1143_v59 }
 0x144   :  { %v1620_v51 = vpop.eup %1619  ;;  %v731_v54 = vmul.f32 %v1618_v30, %v2304_v18  ;;  %v716_v35 = vpop.xlane.xlu2 %715 }
 0x145   :  { %v1622_v37 = vpop.eup %1621  ;;  %v730_v6 = vmul.f32 %v1620_v51, %v2304_v18  ;;  %v713_v4 = vpop.xlane.xlu1 %712  ;;  %1623 = vtanh.f32 %v716_v35  ;;  %v1482_v35 = vld [vmem:[#allocation6 + $0x4f] ss:$0 sm:$0xff] }
 0x146   :  { %v2326_v29 = vadd.f32 %v731_v54, %v665_v55  ;;  %v729_v43 = vmul.f32 %v1622_v37, %v2304_v18  ;;  %1625 = vtanh.f32 %v713_v4  ;;  %v710_v44 = vpop.xlane.xlu0 %709  ;;  %v1152_v54 = vsel %vm100_vm0, %v1134_v53, 0.0 }
 0x147   :  { %v2331_v14 = vadd.f32 %v730_v6, %v2279_v57  ;;  %1627 = vtanh.f32 %v710_v44  ;;  %v1136_v6 = vmul.f32 %v1480_v33, %v1892_v27  ;;  %v1207_v44 = vmul.f32 %v1482_v35, %v1870_v2 }
 0x148   :  { %v737_v48 = vadd.f32 %v729_v43, %v2284_v0 }
 0x149   :  { %1082 = vadd.xlane.f32.xlu2 %v1081_v12  ;;  %1215 = vadd.xlane.f32.xlu1 %v1214_v9  ;;  %v1158_v21 = vsel %vm100_vm0, %v1136_v6, 0.0 }
 0x14b   :  { %v1624_v20 = vpop.eup %1623  ;;  %1212 = vadd.xlane.f32.xlu0 %v1211_v49 }
 0x14c   :  { %v1626_v57 = vpop.eup %1625  ;;  %v734_v3 = vmul.f32 %v1624_v20, %v2304_v18  ;;  %v775_v25 = vpop.xlane.xlu2 %774  ;;  %v1223_v20 = vsel %vm100_vm0, %v1207_v44, 0.0 }
 0x14d   :  { %v1628_v61 = vpop.eup %1627  ;;  %v733_v0 = vmul.f32 %v1626_v57, %v2304_v18  ;;  %v772_v34 = vpop.xlane.xlu1 %771  ;;  %1629 = vtanh.f32 %v775_v25  ;;  %v2381_v57 = vstv %s1324_s10  ;;  %v1210_v25 = vmul.f32 %v1483_v38, %v1892_v27 }
 0x14e   :  { %v2341_v55 = vadd.f32 %v734_v3, %v668_v60  ;;  %v732_v63 = vmul.f32 %v1628_v61, %v2304_v18  ;;  %1631 = vtanh.f32 %v772_v34  ;;  %v769_v16 = vpop.xlane.xlu0 %768  ;;  %v1135_v18 = vmul.f32 %v1478_v5, %v1896_v31 }
 0x14f   :  { %v2346_v1 = vadd.f32 %v733_v0, %v2294_v50  ;;  %1633 = vtanh.f32 %v769_v16  ;;  %v1206_v50 = vmul.f32 %v1477_v41, %v1880_v13  ;;  %v1481_v13 = vld [vmem:[#allocation6 + $0x5f] ss:$0 sm:$0xff]  ;;  %v1209_v0 = vmul.f32 %v1484_v52, %v1896_v31 }
 0x150   :  { %v740_v7 = vadd.f32 %v732_v63, %v2299_v32  ;;  %v1155_v28 = vsel %vm100_vm0, %v1135_v18, 0.0  ;;  %v1208_v36 = vmul.f32 %v1481_v13, %v1877_v10  ;;  %v1232_v27 = vsel %vm100_vm0, %v1210_v25, 0.0 }
 0x151   :  { %1085 = vadd.xlane.f32.xlu2 %v1084_v39  ;;  %1218 = vadd.xlane.f32.xlu1 %v1217_v58  ;;  %v1220_v30 = vsel %vm100_vm0, %v1206_v50, 0.0 }
 0x153   :  { %v1630_v8 = vpop.eup %1629  ;;  %1150 = vadd.xlane.f32.xlu0 %v1149_v47 }
 0x154   :  { %v1632_v42 = vpop.eup %1631  ;;  %v803_v15 = vmul.f32 %v1630_v8, %v2351_v45  ;;  %v784_v19 = vpop.xlane.xlu2 %783 }
 0x155   :  { %v1634_v32 = vpop.eup %1633  ;;  %v802_v40 = vmul.f32 %v1632_v42, %v2351_v45  ;;  %v781_v23 = vpop.xlane.xlu1 %780  ;;  %1635 = vtanh.f32 %v784_v19 }
 0x156   :  { %v2358_v24 = vadd.f32 %v803_v15, %v737_v48  ;;  %v801_v60 = vmul.f32 %v1634_v32, %v2351_v45  ;;  %1637 = vtanh.f32 %v781_v23  ;;  %v778_v59 = vpop.xlane.xlu0 %777  ;;  %v1226_v48 = vsel %vm100_vm0, %v1208_v36, 0.0 }
 0x157   :  { %v2363_v26 = vadd.f32 %v802_v40, %v2311_v62  ;;  %1639 = vtanh.f32 %v778_v59 }
 0x158   :  { %v809_v51 = vadd.f32 %v801_v60, %v2316_v22 }
 0x159   :  { %1156 = vadd.xlane.f32.xlu2 %v1155_v28  ;;  %1221 = vadd.xlane.f32.xlu1 %v1220_v30 }
 0x15b   :  { %v1636_v37 = vpop.eup %1635  ;;  %1153 = vadd.xlane.f32.xlu0 %v1152_v54 }
 0x15c   :  { %v1638_v62 = vpop.eup %1637  ;;  %v806_v4 = vmul.f32 %v1636_v37, %v2351_v45  ;;  %v843_v43 = vpop.xlane.xlu2 %842 }
 0x15d   :  { %v1640_v12 = vpop.eup %1639  ;;  %v805_v22 = vmul.f32 %v1638_v62, %v2351_v45  ;;  %v790_v17 = vpop.xlane.xlu1 %789  ;;  %1641 = vtanh.f32 %v843_v43 }
 0x15e   :  { %v2373_v9 = vadd.f32 %v806_v4, %v740_v7  ;;  %v804_v11 = vmul.f32 %v1640_v12, %v2351_v45  ;;  %1643 = vtanh.f32 %v790_v17  ;;  %v787_v10 = vpop.xlane.xlu0 %786  ;;  %v1229_v7 = vsel %vm100_vm0, %v1209_v0, 0.0 }
 0x15f   :  { %v813_v49 = vadd.f32 %v805_v22, %v2326_v29  ;;  %1645 = vtanh.f32 %v787_v10 }
 0x160   :  { %v812_v2 = vadd.f32 %v804_v11, %v2331_v14 }
 0x161   :  { %1227 = vadd.xlane.f32.xlu2 %v1226_v48  ;;  %1159 = vadd.xlane.f32.xlu1 %v1158_v21 }
 0x163   :  { %v1642_v3 = vpop.eup %1641  ;;  %1224 = vadd.xlane.f32.xlu0 %v1223_v20 }
 0x164   :  { %v1644_v56 = vpop.eup %1643  ;;  %v875_v29 = vmul.f32 %v1642_v3, %v2381_v57  ;;  %v852_v61 = vpop.xlane.xlu2 %851 }
 0x165   :  { %v1646_v34 = vpop.eup %1645  ;;  %v808_v14 = vmul.f32 %v1644_v56, %v2351_v45  ;;  %v849_v63 = vpop.xlane.xlu1 %848  ;;  %1647 = vtanh.f32 %v852_v61 }
 0x166   :  { %v883_v16 = vadd.f32 %v875_v29, %v809_v51  ;;  %v807_v39 = vmul.f32 %v1646_v34, %v2351_v45  ;;  %1649 = vtanh.f32 %v849_v63  ;;  %v846_v5 = vpop.xlane.xlu0 %845  ;;  %v948_v51 = vstv %s1325_s11 }
 0x167   :  { %v816_v58 = vadd.f32 %v808_v14, %v2341_v55  ;;  %1651 = vtanh.f32 %v846_v5 }
 0x168   :  { %v815_v41 = vadd.f32 %v807_v39, %v2346_v1 }
 0x169   :  { %1233 = vadd.xlane.f32.xlu1 %v1232_v27  ;;  %v2414_v27 = vstv %s1326_s12 }
 0x16b   :  { %v1648_v31 = vpop.eup %1647  ;;  %1230 = vadd.xlane.f32.xlu0 %v1229_v7 }
 0x16c   :  { %v1650_v47 = vpop.eup %1649  ;;  %v878_v46 = vmul.f32 %v1648_v31, %v2381_v57  ;;  %v861_v18 = vpop.xlane.xlu2 %860 }
 0x16d   :  { %v1652_v8 = vpop.eup %1651  ;;  %v877_v45 = vmul.f32 %v1650_v47, %v2381_v57  ;;  %v858_v50 = vpop.xlane.xlu1 %857  ;;  %1653 = vtanh.f32 %v861_v18 }
 0x16e   :  { %v886_v55 = vadd.f32 %v878_v46, %v812_v2  ;;  %v876_v42 = vmul.f32 %v1652_v8, %v2381_v57  ;;  %1655 = vtanh.f32 %v858_v50  ;;  %v855_v15 = vpop.xlane.xlu0 %854 }
 0x16f   :  { %v885_v1 = vadd.f32 %v877_v45, %v2358_v24  ;;  %1657 = vtanh.f32 %v855_v15 }
 0x170   :  { %v884_v19 = vadd.f32 %v876_v42, %v2363_v26 }
 0x173   :  { %v1654_v53 = vpop.eup %1653 }
 0x174   :  { %v1656_v32 = vpop.eup %1655  ;;  %v881_v40 = vmul.f32 %v1654_v53, %v2381_v57  ;;  %v920_v23 = vpop.xlane.xlu2 %919 }
 0x175   :  { %v1658_v60 = vpop.eup %1657  ;;  %v880_v59 = vmul.f32 %v1656_v32, %v2381_v57  ;;  %v917_v28 = vpop.xlane.xlu1 %916  ;;  %1659 = vtanh.f32 %v920_v23 }
 0x176   :  { %v889_v13 = vadd.f32 %v881_v40, %v815_v41  ;;  %v879_v30 = vmul.f32 %v1658_v60, %v2381_v57  ;;  %1661 = vtanh.f32 %v917_v28  ;;  %v864_v33 = vpop.xlane.xlu0 %863 }
 0x177   :  { %v888_v24 = vadd.f32 %v880_v59, %v2373_v9  ;;  %1663 = vtanh.f32 %v864_v33 }
 0x178   :  { %v887_v26 = vadd.f32 %v879_v30, %v813_v49 }
 0x17b   :  { %v1660_v54 = vpop.eup %1659 }
 0x17c   :  { %v1662_v35 = vpop.eup %1661  ;;  %v950_v36 = vmul.f32 %v1660_v54, %v948_v51  ;;  %v929_v37 = vpop.xlane.xlu2 %928  ;;  %v2434_v54 = vstv %s1328_s14 }
 0x17d   :  { %v1664_v6 = vpop.eup %1663  ;;  %v949_v62 = vmul.f32 %v1662_v35, %v948_v51  ;;  %v926_v4 = vpop.xlane.xlu1 %925  ;;  %1665 = vtanh.f32 %v929_v37 }
 0x17e   :  { %v958_v43 = vadd.f32 %v950_v36, %v884_v19  ;;  %v882_v44 = vmul.f32 %v1664_v6, %v2381_v57  ;;  %1667 = vtanh.f32 %v926_v4  ;;  %v923_v12 = vpop.xlane.xlu0 %922 }
 0x17f   :  { %v957_v22 = vadd.f32 %v949_v62, %v883_v16  ;;  %1669 = vtanh.f32 %v923_v12  ;;  %v2440_v12 = vstv %s1329_s15 }
 0x180   :  { %v890_v17 = vadd.f32 %v882_v44, %v816_v58 }
 0x183   :  { %v1666_v9 = vpop.eup %1665 }
 0x184   :  { %v1668_v11 = vpop.eup %1667  ;;  %v953_v10 = vmul.f32 %v1666_v9, %v948_v51  ;;  %v938_v48 = vpop.xlane.xlu2 %937 }
 0x185   :  { %v1670_v49 = vpop.eup %1669  ;;  %v952_v21 = vmul.f32 %v1668_v11, %v948_v51  ;;  %v935_v38 = vpop.xlane.xlu1 %934  ;;  %1671 = vtanh.f32 %v938_v48 }
 0x186   :  { %v2402_v2 = vadd.f32 %v953_v10, %v887_v26  ;;  %v951_v20 = vmul.f32 %v1670_v49, %v948_v51  ;;  %1673 = vtanh.f32 %v935_v38  ;;  %v932_v52 = vpop.xlane.xlu0 %931 }
 0x187   :  { %v2404_v3 = vadd.f32 %v952_v21, %v886_v55  ;;  %1675 = vtanh.f32 %v932_v52 }
 0x188   :  { %v2406_v57 = vadd.f32 %v951_v20, %v885_v1 }
 0x18b   :  { %v1672_v25 = vpop.eup %1671 }
 0x18c   :  { %v1674_v56 = vpop.eup %1673  ;;  %v956_v29 = vmul.f32 %v1672_v25, %v948_v51  ;;  %v997_v61 = vpop.xlane.xlu2 %996 }
 0x18d   :  { %v1676_v0 = vpop.eup %1675  ;;  %v955_v34 = vmul.f32 %v1674_v56, %v948_v51  ;;  %v994_v14 = vpop.xlane.xlu1 %993 }
 0x18e   :  { %v2408_v63 = vadd.f32 %v956_v29, %v890_v17  ;;  %v954_v16 = vmul.f32 %v1676_v0, %v948_v51  ;;  %1677 = vtanh.f32 %v994_v14  ;;  %v991_v39 = vpop.xlane.xlu0 %990 }
 0x18f   :  { %v2410_v5 = vadd.f32 %v955_v34, %v889_v13  ;;  %1679 = vtanh.f32 %v991_v39 }
 0x190   :  { %v2412_v58 = vadd.f32 %v954_v16, %v888_v24  ;;  %v2432_v24 = vstv %s1327_s13 }
 0x194   :  { %v1678_v41 = vpop.eup %1677  ;;  %v2416_v7 = vpop.xlane.xlu2 %1005 }
 0x195   :  { %v1680_v31 = vpop.eup %1679  ;;  %v1024_v47 = vmul.f32 %v1678_v41, %v2414_v27  ;;  %v2419_v46 = vpop.xlane.xlu1 %1002 }
 0x196   :  { %v1023_v18 = vmul.f32 %v1680_v31, %v2414_v27  ;;  %v1000_v8 = vpop.xlane.xlu0 %999 }
 0x197   :  { %v1032_v45 = vadd.f32 %v1024_v47, %v958_v43  ;;  %v1269_v43 = vlaneseq }
 0x198   :  { %v1031_v50 = vadd.f32 %v1023_v18, %v957_v22 }
 0x199   :  { %v2445_v38 = vand.u32 127, %v1269_v43 }
 0x19c   :  { %v1065_v55 = vpop.xlane.xlu2 %1064 }
 0x19d   :  { %v2422_v42 = vpop.xlane.xlu1 %1011 }
 0x19e   :  { %v2424_v15 = vpop.xlane.xlu0 %1008 }
 0x1a4   :  { %v1074_v1 = vpop.xlane.xlu2 %1073 }
 0x1a5   :  { %v1071_v19 = vpop.xlane.xlu1 %1070 }
 0x1a6   :  { %v1068_v53 = vpop.xlane.xlu0 %1067 }
 0x1a7   :  { %1681 = vtanh.f32 %v1068_v53 }
 0x1a8   :  { %1683 = vtanh.f32 %v1065_v55 }
 0x1ac   :  { %v2426_v32 = vpop.xlane.xlu2 %1076 }
 0x1ad   :  { %v1142_v40 = vpop.xlane.xlu1 %1141  ;;  %v1682_v13 = vpop.eup %1681 }
 0x1ae   :  { %v1139_v23 = vpop.xlane.xlu0 %1138  ;;  %1685 = vtanh.f32 %v1142_v40  ;;  %v1684_v33 = vpop.eup %1683  ;;  %v1098_v37 = vmul.f32 %v1682_v13, %v2432_v24 }
 0x1af   :  { %1687 = vtanh.f32 %v1139_v23  ;;  %v1097_v6 = vmul.f32 %v1684_v33, %v2432_v24 }
 0x1b0   :  { %1689 = vtanh.f32 %v997_v61  ;;  %v1106_v17 = vadd.f32 %v1098_v37, %v1032_v45 }
 0x1b1   :  { %1691 = vtanh.f32 %v1071_v19  ;;  %v1105_v10 = vadd.f32 %v1097_v6, %v1031_v50 }
 0x1b4   :  { %v1148_v60 = vpop.xlane.xlu2 %1147  ;;  %v1686_v51 = vpop.eup %1685 }
 0x1b5   :  { %v2428_v59 = vpop.xlane.xlu1 %1079  ;;  %v1688_v36 = vpop.eup %1687  ;;  %v1172_v4 = vmul.f32 %v1686_v51, %v2434_v54 }
 0x1b6   :  { %v1145_v28 = vpop.xlane.xlu0 %1144  ;;  %v1690_v62 = vpop.eup %1689  ;;  %v1171_v44 = vmul.f32 %v1688_v36, %v2434_v54 }
 0x1b7   :  { %v1692_v22 = vpop.eup %1691  ;;  %v1025_v11 = vmul.f32 %v1690_v62, %v2414_v27  ;;  %v1180_v21 = vadd.f32 %v1172_v4, %v1106_v17 }
 0x1b8   :  { %v1179_v56 = vadd.f32 %v1171_v44, %v1105_v10  ;;  %v1099_v0 = vmul.f32 %v1692_v22, %v2432_v24 }
 0x1b9   :  { %v1033_v16 = vadd.f32 %v1025_v11, %v2406_v57 }
 0x1bc   :  { %v2430_v30 = vpop.xlane.xlu2 %1082 }
 0x1bd   :  { %v1216_v26 = vpop.xlane.xlu1 %1215 }
 0x1be   :  { %1693 = vtanh.f32 %v1216_v26  ;;  %v1213_v35 = vpop.xlane.xlu0 %1212 }
 0x1bf   :  { %1695 = vtanh.f32 %v1213_v35 }
 0x1c0   :  { %1697 = vtanh.f32 %v1145_v28 }
 0x1c1   :  { %1699 = vtanh.f32 %v1000_v8  ;;  %v1107_v8 = vadd.f32 %v1099_v0, %v1033_v16 }
 0x1c2   :  { %1701 = vtanh.f32 %v1074_v1 }
 0x1c4   :  { %v1694_v9 = vpop.eup %1693  ;;  %v2443_v48 = vpop.xlane.xlu2 %1085 }
 0x1c5   :  { %v1696_v49 = vpop.eup %1695  ;;  %v1246_v20 = vmul.f32 %v1694_v9, %v2440_v12  ;;  %v1219_v52 = vpop.xlane.xlu1 %1218 }
 0x1c6   :  { %v1698_v25 = vpop.eup %1697  ;;  %v1245_v29 = vmul.f32 %v1696_v49, %v2440_v12  ;;  %1703 = vtanh.f32 %v1219_v52  ;;  %v1151_v61 = vpop.xlane.xlu0 %1150 }
 0x1c7   :  { %v1254_v34 = vadd.f32 %v1246_v20, %v1180_v21  ;;  %1705 = vtanh.f32 %v1148_v60  ;;  %v1173_v39 = vmul.f32 %v1698_v25, %v2434_v54  ;;  %v1700_v31 = vpop.eup %1699 }
 0x1c8   :  { %v1253_v14 = vadd.f32 %v1245_v29, %v1179_v56  ;;  %1707 = vtanh.f32 %v2416_v7  ;;  %v1702_v18 = vpop.eup %1701  ;;  %v1026_v57 = vmul.f32 %v1700_v31, %v2414_v27 }
 0x1c9   :  { %v1272_v41 = vperm.slane %v1254_v34, %v2445_v38  ;;  %1709 = vtanh.f32 %v2419_v46  ;;  %v1181_v1 = vadd.f32 %v1173_v39, %v1107_v8  ;;  %v1100_v23 = vmul.f32 %v1702_v18, %v2432_v24 }
 0x1ca   :  { %v1271_v47 = vperm.slane %v1253_v14, %v2445_v38  ;;  %1711 = vtanh.f32 %v2426_v32  ;;  %v1034_v28 = vadd.f32 %v1026_v57, %v2404_v3 }
 0x1cb   :  { %1713 = vtanh.f32 %v2428_v59 }
 0x1cc   :  { %v1704_v45 = vpop.eup %1703  ;;  %v1280_v50 = vsel %vm1279_vm1, %v1272_v41, %v1271_v47  ;;  %v1157_v55 = vpop.xlane.xlu2 %1156  ;;  %v1108_v35 = vadd.f32 %v1100_v23, %v1034_v28 }
 0x1cd   :  { %v1247_v19 = vmul.f32 %v1704_v45, %v2440_v12  ;;  %v1222_v53 = vpop.xlane.xlu1 %1221  ;;  %v1706_v7 = vpop.eup %1705 }
 0x1ce   :  { %1715 = vtanh.f32 %v1222_v53  ;;  %v1154_v40 = vpop.xlane.xlu0 %1153  ;;  %v1708_v60 = vpop.eup %1707  ;;  %v1174_v13 = vmul.f32 %v1706_v7, %v2434_v54 }
 0x1cf   :  { %v1255_v46 = vadd.f32 %v1247_v19, %v1181_v1  ;;  %1717 = vtanh.f32 %v1154_v40  ;;  %v1710_v32 = vpop.eup %1709  ;;  %v1028_v51 = vmul.f32 %v1708_v60, %v2414_v27 }
 0x1d0   :  { %1719 = vtanh.f32 %v1151_v61  ;;  %v1712_v33 = vpop.eup %1711  ;;  %v1182_v62 = vadd.f32 %v1174_v13, %v1108_v35  ;;  %v1027_v44 = vmul.f32 %v1710_v32, %v2414_v27 }
 0x1d1   :  { %v1273_v59 = vperm.slane %v1255_v46, %v2445_v38  ;;  %1721 = vtanh.f32 %v2422_v42  ;;  %v1714_v26 = vpop.eup %1713  ;;  %v1036_v17 = vadd.f32 %v1028_v51, %v2412_v58  ;;  %v1101_v11 = vmul.f32 %v1712_v33, %v2432_v24 }
 0x1d2   :  { %1723 = vtanh.f32 %v2424_v15  ;;  %v1102_v42 = vmul.f32 %v1714_v26, %v2432_v24 }
 0x1d3   :  { %v1282_v36 = vsel %vm1281_vm2, %v1273_v59, %v1280_v50  ;;  %1725 = vtanh.f32 %v2430_v30 }
 0x1d4   :  { %v1716_v37 = vpop.eup %1715  ;;  %v1228_v6 = vpop.xlane.xlu2 %1227  ;;  %v1110_v52 = vadd.f32 %v1102_v42, %v1036_v17 }
 0x1d5   :  { %v1718_v3 = vpop.eup %1717  ;;  %v1248_v4 = vmul.f32 %v1716_v37, %v2440_v12  ;;  %v1160_v43 = vpop.xlane.xlu1 %1159  ;;  %1727 = vtanh.f32 %v1228_v6 }
 0x1d6   :  { %1729 = vtanh.f32 %v2443_v48  ;;  %v1225_v22 = vpop.xlane.xlu0 %1224  ;;  %v1720_v15 = vpop.eup %1719  ;;  %v1176_v10 = vmul.f32 %v1718_v3, %v2434_v54  ;;  %v1035_v48 = vadd.f32 %v1027_v44, %v2402_v2 }
 0x1d7   :  { %v1256_v9 = vadd.f32 %v1248_v4, %v1182_v62  ;;  %1731 = vtanh.f32 %v1225_v22  ;;  %v1722_v30 = vpop.eup %1721  ;;  %v1175_v25 = vmul.f32 %v1720_v15, %v2434_v54 }
 0x1d8   :  { %1733 = vtanh.f32 %v1160_v43  ;;  %v1724_v49 = vpop.eup %1723  ;;  %v1109_v61 = vadd.f32 %v1101_v11, %v1035_v48  ;;  %v1184_v0 = vadd.f32 %v1176_v10, %v1110_v52  ;;  %v1030_v16 = vmul.f32 %v1722_v30, %v2414_v27 }
 0x1d9   :  { %v1274_v21 = vperm.slane %v1256_v9, %v2445_v38  ;;  %1735 = vtanh.f32 %v1157_v55  ;;  %v1726_v20 = vpop.eup %1725  ;;  %v1029_v39 = vmul.f32 %v1724_v49, %v2414_v27 }
 0x1da   :  { %v1183_v47 = vadd.f32 %v1175_v25, %v1109_v61  ;;  %v1103_v55 = vmul.f32 %v1726_v20, %v2432_v24  ;;  %v1038_v1 = vadd.f32 %v1030_v16, %v2408_v63 }
 0x1db   :  { %v1728_v58 = vpop.eup %1727  ;;  %v1284_v56 = vsel %vm1283_vm3, %v1274_v21, %v1282_v36  ;;  %v1037_v53 = vadd.f32 %v1029_v39, %v2410_v5 }
 0x1dc   :  { %v1730_v29 = vpop.eup %1729  ;;  %v1250_v34 = vmul.f32 %v1728_v58, %v2440_v12 }
 0x1dd   :  { %v1732_v14 = vpop.eup %1731  ;;  %v1234_v41 = vpop.xlane.xlu1 %1233  ;;  %v1104_v50 = vmul.f32 %v1730_v29, %v2432_v24  ;;  %v1111_v60 = vadd.f32 %v1103_v55, %v1037_v53 }
 0x1de   :  { %v1734_v31 = vpop.eup %1733  ;;  %v1258_v18 = vadd.f32 %v1250_v34, %v1184_v0  ;;  %v1249_v2 = vmul.f32 %v1732_v14, %v2440_v12  ;;  %1737 = vtanh.f32 %v1234_v41  ;;  %v1231_v8 = vpop.xlane.xlu0 %1230 }
 0x1df   :  { %v1736_v45 = vpop.eup %1735  ;;  %1739 = vtanh.f32 %v1231_v8  ;;  %v1178_v19 = vmul.f32 %v1734_v31, %v2434_v54  ;;  %v1112_v23 = vadd.f32 %v1104_v50, %v1038_v1 }
 0x1e0   :  { %v1257_v57 = vadd.f32 %v1249_v2, %v1183_v47  ;;  %v1276_v27 = vperm.slane %v1258_v18, %v2445_v38  ;;  %v1177_v7 = vmul.f32 %v1736_v45, %v2434_v54 }
 0x1e1   :  { %v1186_v28 = vadd.f32 %v1178_v19, %v1112_v23 }
 0x1e2   :  { %v1275_v40 = vperm.slane %v1257_v57, %v2445_v38  ;;  %v1185_v59 = vadd.f32 %v1177_v7, %v1111_v60 }
 0x1e4   :  { %v1738_v46 = vpop.eup %1737  ;;  %v1286_v32 = vsel %vm1285_vm4, %v1275_v40, %v1284_v56 }
 0x1e5   :  { %v1740_v24 = vpop.eup %1739  ;;  %v1252_v63 = vmul.f32 %v1738_v46, %v2440_v12  ;;  %v1288_v13 = vsel %vm1287_vm5, %v1276_v27, %v1286_v32 }
 0x1e6   :  { %v1251_v33 = vmul.f32 %v1740_v24, %v2440_v12 }
 0x1e7   :  { %v1260_v26 = vadd.f32 %v1252_v63, %v1186_v28 }
 0x1e8   :  { %v1259_v51 = vadd.f32 %v1251_v33, %v1185_v59 }
 0x1e9   :  { %v1278_v5 = vperm.slane %v1260_v26, %v2445_v38 }
 0x1ea   :  { %v1277_v54 = vperm.slane %v1259_v51, %v2445_v38 }
 0x1ec   :  { %v1290_v35 = vsel %vm1289_vm6, %v1277_v54, %v1288_v13 }
 0x1ed   :  { %v1292_v36 = vsel %vm1291_vm7, %v1278_v5, %v1290_v35 }
 0x1ee   :  { %1295 = vst.msk [vmem:[#allocation9] sm:$0xff] %vm1294_vm8, %v1292_v36 }
 0x1ef   :  { %1306 = dma.vmem_to_hbm [thread:$0]  %s1302_s17, 128, %s1304_s20, [#allocation4]  }
 0x1f0   :  { %1831 = dma.done.wait [#allocation4], 128  }
 0x1f1   :  { %1832 = vsyncadd [#allocation4], 4294967168 }
 0x1f2   :  { %1311 = vsyncpa [#allocation3], 1 }
 0x1f3   :  { %1312 = vsyncpa [#allocation7], 1 }
 0x1f4   :  { %1313 = vsyncpa [#allocation4], 1 }
 0x1f5   :  { %1314 = vsyncpa [#allocation5], 1 }

</bundles_post_ra>
